<compile_context>
chip_gen: v7x
topology: tpu7x:2x2x1
jax: 0.10.0
libtpu: 0.0.40
codegen_flags: <defaults>
</compile_context>

<pallas_src>
import jax
import jax.numpy as jnp
from jax.experimental import pallas as pl
from jax.experimental.pallas import tpu as pltpu

_BN_EPS = 1e-3  # BatchNorm2d(..., eps=0.001) in the module


def _hw_budget():
    """Generation-aware (vmem_limit_bytes, per-stream block byte target)."""
    try:
        vmem = int(pltpu.get_tpu_info().vmem_capacity_bytes)
    except Exception:                      # query unavailable -> assume the small budget
        vmem = 64 * 1024 * 1024
    if vmem >= 96 * 1024 * 1024:           # 128-MiB parts (v5e / v6e): larger blocks
        return 96 * 1024 * 1024, 8 * 1024 * 1024
    return 32 * 1024 * 1024, 4 * 1024 * 1024   # 64-MiB v7x-class parts


def _pick_h_tile(H, W, C, pad, target_bytes):
    """Largest divisor of H whose f32 (rows, W, C) tile fits `target_bytes`, with
    rows % pad == 0 (halo blocking) and rows*W 8-aligned (or the full image) so the
    stage-3 (rows*W, C) blocks never need padding or masking."""
    best = None
    for d in range(1, H + 1):
        if H % d or d % pad:
            continue
        if (d * W) % 8 and d != H:
            continue
        if d * W * C * 4 <= target_bytes:
            best = d
    if best is None:
        for d in range(1, H + 1):
            if H % d == 0 and d % pad == 0 and ((d * W) % 8 == 0 or d == H):
                best = d
                break
    return best if best is not None else H


# ------------------ stage 1: depthwise conv + BN + Swish + fused SE squeeze ------------------
def _make_residual_kernel(k, pad, th, W, C, H):
    def kernel(xm_ref, xt_ref, xb_ref, wdw_ref, s1_ref, c1_ref, res_ref, sum_ref):
        i = pl.program_id(1)

        # Assemble the H-halo'd tile: [top pad rows | own th rows | bottom pad rows].
        # The halo views use clamped index maps, so at the image edges they contain
        # arbitrary in-bounds rows; mask them to zero by global-row index (iota mask).
        xh = jnp.concatenate([xt_ref[0], xm_ref[0], xb_ref[0]], axis=0)  # (th+2p, W, C)
        row = jax.lax.broadcasted_iota(jnp.int32, (th + 2 * pad, W, C), 0) + (i * th - pad)
        xh = jnp.where((row >= 0) & (row < H), xh, jnp.zeros_like(xh))

        wall = wdw_ref[...].astype(jnp.float32)                          # (k*k, C)
        acc = jnp.zeros((th, W, C), jnp.float32)
        for kh in range(k):                                              # static unroll, VPU only
            rows = xh[kh:kh + th].astype(jnp.float32)                    # per-tap slab cast
            for kw in range(k):
                d = kw - pad                                             # W-halo in-register
                if d == 0:
                    shifted = rows
                elif d > 0:
                    shifted = jnp.concatenate(
                        [rows[:, d:, :], jnp.zeros((th, d, C), jnp.float32)], axis=1)
                else:
                    shifted = jnp.concatenate(
                        [jnp.zeros((th, -d, C), jnp.float32), rows[:, :W + d, :]], axis=1)
                acc = acc + shifted * wall[kh * k + kw]

        y = acc * s1_ref[0] + c1_ref[0]                                  # folded inference BN1
        y = y * jax.nn.sigmoid(y)                                        # Swish (f32)
        res_ref[0] = y.astype(res_ref.dtype)
        # fused SE squeeze: per-tile channel partial sums (finished by a tiny XLA reduce)
        sum_ref[0, 0] = jnp.sum(jnp.sum(y, axis=0), axis=0, keepdims=True)
    return kernel


# ---------------- stage 3: gate * residual -> 1x1 conv (MXU) + BN2 (+ shortcut) --------------
def _make_project_kernel(shortcut):
    def _body(r_ref, g_ref, wp_ref, s2_ref, c2_ref, x_ref, o_ref):
        y = r_ref[0].astype(jnp.float32) * g_ref[0]                      # (hw, C) * (1, C)
        y = y.astype(wp_ref.dtype)                                       # bf16 feeds MXU natively
        z = jnp.dot(y, wp_ref[...], preferred_element_type=jnp.float32)  # 1x1 conv over channels
        z = z * s2_ref[0] + c2_ref[0]                                    # folded BN2
        if x_ref is not None:
            z = z + x_ref[0].astype(jnp.float32)                         # residual shortcut
        o_ref[0] = z.astype(o_ref.dtype)

    if shortcut:
        def kernel(r_ref, g_ref, wp_ref, s2_ref, c2_ref, x_ref, o_ref):
            _body(r_ref, g_ref, wp_ref, s2_ref, c2_ref, x_ref, o_ref)
    else:
        def kernel(r_ref, g_ref, wp_ref, s2_ref, c2_ref, o_ref):
            _body(r_ref, g_ref, wp_ref, s2_ref, c2_ref, None, o_ref)
    return kernel


def sep_conv(x, params, *, stride=1, h_tile=None, compute_dtype=jnp.bfloat16):
    """Eval-mode forward of SepConv. x: (B, C, H, W) NCHW -> (B, Co, H, W).

    compute_dtype: dtype of the intermediate residual and the 1x1-conv MXU operands
    (accumulation stays f32). bf16 halves the dominant HBM stream; use jnp.float32
    for tight comparison against an f32 reference.
    """
    dw_w = params["dw_w"]                          # (C, k, k) depthwise weight
    C, k, _ = dw_w.shape
    B, Cx, H, W = x.shape
    assert Cx == C, "channel mismatch"
    assert k % 2 == 1 and k >= 3, "kernel_size must be odd and >= 3"
    # TODO(synk): kernel_size == 1 (no-halo) fast path not implemented.
    Co = params["pw_w"].shape[0]
    pad = k // 2
    assert H % pad == 0, "H must be divisible by the halo size"
    shortcut = (stride == 1) and (C == Co)

    # TODO(synk): training-mode stochastic depth (torch.bernoulli(self.p) skip) is host-side
    # RNG control flow; only the eval-mode forward is implemented here.

    vmem_limit, target_bytes = _hw_budget()
    th = int(h_tile) if h_tile is not None else _pick_h_tile(H, W, C, pad, target_bytes)
    assert H % th == 0 and th % pad == 0, "h_tile must divide H and be a multiple of pad"
    n_h = H // th
    HW = H * W
    hw_tile = th * W
    assert hw_tile % 8 == 0 or hw_tile == HW, "stage-3 block rows must be 8-aligned"

    res_dtype = jnp.dtype(compute_dtype)
    x_bytes = x.dtype.itemsize
    r_bytes = res_dtype.itemsize
    hi = jax.lax.Precision.HIGHEST

    # Fold the two inference BatchNorms into per-channel scale/shift.
    s1 = (params["bn1_gamma"] / jnp.sqrt(params["bn1_var"] + _BN_EPS)).astype(jnp.float32)
    c1 = (params["bn1_beta"] - params["bn1_mean"] * s1).astype(jnp.float32)
    s2 = (params["bn2_gamma"] / jnp.sqrt(params["bn2_var"] + _BN_EPS)).astype(jnp.float32)
    c2 = (params["bn2_beta"] - params["bn2_mean"] * s2).astype(jnp.float32)

    # NCHW -> NHWC (channels on lanes). This transpose is the only XLA activation copy.
    x_nhwc = jnp.transpose(x, (0, 2, 3, 1))
    wdw = dw_w.reshape(C, k * k).T.astype(jnp.float32)                   # (k*k, C)

    # ---------------- stage 1: grid = (B, H-tiles), all axes parallel --------------------
    HB = th // pad                                                       # halo-block stride
    residual, sums = pl.pallas_call(
        _make_residual_kernel(k, pad, th, W, C, H),
        out_shape=(jax.ShapeDtypeStruct((B, H, W, C), res_dtype),
                   jax.ShapeDtypeStruct((B, n_h, 1, C), jnp.float32)),
        grid=(B, n_h),
        in_specs=[
            pl.BlockSpec((1, th, W, C), lambda b, i: (b, i, 0, 0)),
            pl.BlockSpec((1, pad, W, C),
                         lambda b, i: (b, jnp.maximum(i * HB - 1, 0), 0, 0)),
            pl.BlockSpec((1, pad, W, C),
                         lambda b, i: (b, jnp.minimum((i + 1) * HB, H // pad - 1), 0, 0)),
            pl.BlockSpec((k * k, C), lambda b, i: (0, 0)),
            pl.BlockSpec((1, C), lambda b, i: (0, 0)),
            pl.BlockSpec((1, C), lambda b, i: (0, 0)),
        ],
        out_specs=(pl.BlockSpec((1, th, W, C), lambda b, i: (b, i, 0, 0)),
                   pl.BlockSpec((1, 1, 1, C), lambda b, i: (b, i, 0, 0))),
        compiler_params=pltpu.CompilerParams(
            dimension_semantics=("parallel", "parallel"),
            vmem_limit_bytes=vmem_limit),
        cost_estimate=pl.CostEstimate(
            flops=B * H * W * C * (2 * k * k + 8),
            transcendentals=B * H * W * C,
            bytes_accessed=B * H * W * C * (x_bytes + r_bytes) + B * n_h * C * 4),
    )(x_nhwc, x_nhwc, x_nhwc, wdw, s1.reshape(1, C), c1.reshape(1, C))

    # ---------------- stage 2: SE excitation on the (B, C) squeeze (tiny, plain JAX) -----
    s = jnp.sum(sums[:, :, 0, :], axis=1) * (1.0 / float(HW))            # (B, C), f32
    h = jnp.dot(s, params["w1"].astype(jnp.float32), precision=hi) + params["b1"].astype(jnp.float32)
    h = h * jax.nn.sigmoid(h)                                            # Swish
    gate = jax.nn.sigmoid(
        jnp.dot(h, params["w2"].astype(jnp.float32), precision=hi) + params["b2"].astype(jnp.float32))
    gate = gate.reshape(B, 1, C)                                         # (B, 1, C), f32

    # ---------------- stage 3: gate * residual -> 1x1 conv -> BN2 (-> + shortcut) --------
    r_flat = residual.reshape(B, HW, C)                                  # free reshape
    wp = params["pw_w"].reshape(Co, C).T.astype(res_dtype)               # (C, Co) MXU operand
    in_specs = [
        pl.BlockSpec((1, hw_tile, C), lambda b, j: (b, j, 0)),
        pl.BlockSpec((1, 1, C), lambda b, j: (b, 0, 0)),
        pl.BlockSpec((C, Co), lambda b, j: (0, 0)),
        pl.BlockSpec((1, Co), lambda b, j: (0, 0)),
        pl.BlockSpec((1, Co), lambda b, j: (0, 0)),
    ]
    args = [r_flat, gate, wp, s2.reshape(1, Co), c2.reshape(1, Co)]
    if shortcut:
        in_specs.append(pl.BlockSpec((1, hw_tile, Co), lambda b, j: (b, j, 0)))
        args.append(x_nhwc.reshape(B, HW, Co))                           # free reshape

    out_flat = pl.pallas_call(
        _make_project_kernel(shortcut),
        out_shape=jax.ShapeDtypeStruct((B, HW, Co), x.dtype),
        grid=(B, n_h),
        in_specs=in_specs,
        out_specs=pl.BlockSpec((1, hw_tile, Co), lambda b, j: (b, j, 0)),
        compiler_params=pltpu.CompilerParams(
            dimension_semantics=("parallel", "parallel"),
            vmem_limit_bytes=vmem_limit),
        cost_estimate=pl.CostEstimate(
            flops=2 * B * HW * C * Co + 3 * B * HW * Co,
            transcendentals=0,
            bytes_accessed=B * HW * (C * r_bytes + Co * x_bytes
                                     + (Co * x_bytes if shortcut else 0)) + C * Co * r_bytes),
    )(*args)

    # TODO(synk): for Co < 128 the stage-3 stores are lane-masked; a lane-dense output
    # slab would help small-Co configs on v5e.
    out = out_flat.reshape(B, H, W, Co)
    return jnp.transpose(out, (0, 3, 1, 2))


# --------------------------------- params + pure-JAX reference ------------------------------
def init_sep_conv_params(key, in_channels, out_channels, kernel_size, se_scale=4):
    C, Co, k = in_channels, out_channels, kernel_size
    Cr = C * se_scale
    ks = jax.random.split(key, 14)
    u = jax.random.uniform
    lim_dw = 1.0 / (k * k) ** 0.5
    lim_c = 1.0 / C ** 0.5
    lim_cr = 1.0 / Cr ** 0.5
    return {
        "dw_w": u(ks[0], (C, k, k), jnp.float32, -lim_dw, lim_dw),
        "bn1_gamma": u(ks[1], (C,), jnp.float32, 0.8, 1.2),
        "bn1_beta": u(ks[2], (C,), jnp.float32, -0.1, 0.1),
        "bn1_mean": u(ks[3], (C,), jnp.float32, -0.1, 0.1),
        "bn1_var": u(ks[4], (C,), jnp.float32, 0.5, 1.5),
        "w1": u(ks[5], (C, Cr), jnp.float32, -lim_c, lim_c),             # stored (in, out)
        "b1": u(ks[6], (Cr,), jnp.float32, -lim_c, lim_c),
        "w2": u(ks[7], (Cr, C), jnp.float32, -lim_cr, lim_cr),
        "b2": u(ks[8], (C,), jnp.float32, -lim_cr, lim_cr),
        "pw_w": u(ks[9], (Co, C), jnp.float32, -lim_c, lim_c),
        "bn2_gamma": u(ks[10], (Co,), jnp.float32, 0.8, 1.2),
        "bn2_beta": u(ks[11], (Co,), jnp.float32, -0.1, 0.1),
        "bn2_mean": u(ks[12], (Co,), jnp.float32, -0.1, 0.1),
        "bn2_var": u(ks[13], (Co,), jnp.float32, 0.5, 1.5),
    }


def sep_conv_ref(x, params, *, stride=1):
    """Pure-JAX mirror of the PyTorch SepConv.forward (eval mode), full-precision."""
    dw_w = params["dw_w"]
    C, k, _ = dw_w.shape
    Co = params["pw_w"].shape[0]
    pad = k // 2
    hi = jax.lax.Precision.HIGHEST

    y = jax.lax.conv_general_dilated(
        x.astype(jnp.float32), dw_w[:, None, :, :].astype(jnp.float32),
        window_strides=(1, 1), padding=[(pad, pad), (pad, pad)],
        dimension_numbers=("NCHW", "OIHW", "NCHW"), feature_group_count=C,
        precision=hi)

    def bn(v, g, b, m, var):
        return (v - m[None, :, None, None]) * (
            g[None, :, None, None] / jnp.sqrt(var[None, :, None, None] + _BN_EPS)
        ) + b[None, :, None, None]

    y = bn(y, params["bn1_gamma"], params["bn1_beta"], params["bn1_mean"], params["bn1_var"])
    y = y * jax.nn.sigmoid(y)                                            # Swish

    s = jnp.mean(y, axis=(2, 3))                                         # squeeze
    h = jnp.dot(s, params["w1"], precision=hi) + params["b1"]
    h = h * jax.nn.sigmoid(h)
    g = jax.nn.sigmoid(jnp.dot(h, params["w2"], precision=hi) + params["b2"])
    y = y * g[:, :, None, None]

    z = jnp.einsum("bchw,oc->bohw", y, params["pw_w"], precision=hi)     # 1x1 projection conv
    z = bn(z, params["bn2_gamma"], params["bn2_beta"], params["bn2_mean"], params["bn2_var"])
    if stride == 1 and C == Co:
        z = z + x
    return z.astype(x.dtype)


if __name__ == "__main__":
    key = jax.random.PRNGKey(0)
    k_x, k_p1, k_p2 = jax.random.split(key, 3)

    B, C, H, W, ksize, r = 2, 4, 16, 16, 3, 4
    x = jax.random.normal(k_x, (B, C, H, W), jnp.float32)

    # config 1: in_channels == out_channels -> residual shortcut path; f32 compute path,
    # h_tile=8 forces 2 H-tiles so the halo masking / multi-tile squeeze is exercised.
    p1 = init_sep_conv_params(k_p1, C, C, ksize, se_scale=r)
    out1 = jax.block_until_ready(sep_conv(x, p1, stride=1, h_tile=8,
                                          compute_dtype=jnp.float32))
    ref1 = sep_conv_ref(x, p1, stride=1)
    assert out1.shape == (B, C, H, W)
    err1 = float(jnp.max(jnp.abs(out1 - ref1)))
    assert err1 < 1e-3, f"shortcut path mismatch vs reference: {err1}"

    # config 2: out_channels != in_channels -> plain projection (no shortcut); default
    # bf16 residual / MXU operands and a single full-image H tile.
    Co2 = 8
    p2 = init_sep_conv_params(k_p2, C, Co2, ksize, se_scale=r)
    out2 = jax.block_until_ready(sep_conv(x, p2, stride=1))
    ref2 = sep_conv_ref(x, p2, stride=1)
    assert out2.shape == (B, Co2, H, W)
    err2 = float(jnp.max(jnp.abs(out2 - ref2)))
    assert err2 < 3e-2, f"projection path mismatch vs reference (bf16 path): {err2}"

    print("KERNEL_OK")
</pallas_src>

<mosaic_0001>
module attributes {stable_mosaic.version = 11 : i64} {
  func.func @kernel(%arg0: i32, %arg1: i32, %arg2: memref<1x8x16x4xf32, #tpu.memory_space<vmem>>, %arg3: memref<1x1x16x4xf32, #tpu.memory_space<vmem>>, %arg4: memref<1x1x16x4xf32, #tpu.memory_space<vmem>>, %arg5: memref<9x4xf32, #tpu.memory_space<vmem>>, %arg6: memref<1x4xf32, #tpu.memory_space<vmem>>, %arg7: memref<1x4xf32, #tpu.memory_space<vmem>>, %arg8: memref<1x8x16x4xf32, #tpu.memory_space<vmem>>, %arg9: memref<1x1x1x4xf32, #tpu.memory_space<vmem>>) attributes {dimension_semantics = [#tpu.dimension_semantics<parallel>, #tpu.dimension_semantics<parallel>], iteration_bounds = array<i64: 2, 2>, scalar_prefetch = 0 : i64, scratch_operands = 0 : i64, tpu.core_type = #tpu.core_type<tc>, window_params = [{transform_indices = @transform_0, window_bounds = array<i64: 1, 8, 16, 4>}, {transform_indices = @transform_1, window_bounds = array<i64: 1, 1, 16, 4>}, {transform_indices = @transform_2, window_bounds = array<i64: 1, 1, 16, 4>}, {pipeline_mode = #tpu.pipeline_mode<synchronous>, transform_indices = @transform_3, window_bounds = array<i64: 9, 4>}, {pipeline_mode = #tpu.pipeline_mode<synchronous>, transform_indices = @transform_4, window_bounds = array<i64: 1, 4>}, {pipeline_mode = #tpu.pipeline_mode<synchronous>, transform_indices = @transform_5, window_bounds = array<i64: 1, 4>}, {transform_indices = @transform_6, window_bounds = array<i64: 1, 8, 16, 4>}, {transform_indices = @transform_7, window_bounds = array<i64: 1, 1, 1, 4>}]} {
    %c0 = arith.constant 0 : index
    %c0_0 = arith.constant 0 : index
    %c0_1 = arith.constant 0 : index
    %c0_2 = arith.constant 0 : index
    %0 = vector.load %arg3[%c0, %c0_0, %c0_1, %c0_2] : memref<1x1x16x4xf32, #tpu.memory_space<vmem>>, vector<1x1x16x4xf32>
    %1 = vector.shape_cast %0 : vector<1x1x16x4xf32> to vector<1x16x4xf32>
    %c0_3 = arith.constant 0 : index
    %c0_4 = arith.constant 0 : index
    %c0_5 = arith.constant 0 : index
    %c0_6 = arith.constant 0 : index
    %2 = vector.load %arg2[%c0_3, %c0_4, %c0_5, %c0_6] : memref<1x8x16x4xf32, #tpu.memory_space<vmem>>, vector<1x8x16x4xf32>
    %3 = vector.shape_cast %2 : vector<1x8x16x4xf32> to vector<8x16x4xf32>
    %c0_7 = arith.constant 0 : index
    %c0_8 = arith.constant 0 : index
    %c0_9 = arith.constant 0 : index
    %c0_10 = arith.constant 0 : index
    %4 = vector.load %arg4[%c0_7, %c0_8, %c0_9, %c0_10] : memref<1x1x16x4xf32, #tpu.memory_space<vmem>>, vector<1x1x16x4xf32>
    %5 = vector.shape_cast %4 : vector<1x1x16x4xf32> to vector<1x16x4xf32>
    %6 = tpu.concatenate %1, %3, %5 in 0 : vector<1x16x4xf32>, vector<8x16x4xf32>, vector<1x16x4xf32> -> vector<10x16x4xf32>
    %7 = tpu.iota {dimensions = array<i32: 0>} : vector<10x16x4xi32>
    %c8_i32 = arith.constant 8 : i32
    %8 = arith.muli %arg1, %c8_i32 : i32
    %c1_i32 = arith.constant 1 : i32
    %9 = arith.subi %8, %c1_i32 : i32
    %10 = vector.broadcast %9 : i32 to vector<10x16x4xi32>
    %11 = arith.addi %7, %10 : vector<10x16x4xi32>
    %c0_i32 = arith.constant 0 : i32
    %12 = vector.broadcast %c0_i32 : i32 to vector<10x16x4xi32>
    %13 = arith.cmpi sge, %11, %12 : vector<10x16x4xi32>
    %c16_i32 = arith.constant 16 : i32
    %14 = vector.broadcast %c16_i32 : i32 to vector<10x16x4xi32>
    %15 = arith.cmpi slt, %11, %14 : vector<10x16x4xi32>
    %16 = arith.andi %13, %15 : vector<10x16x4xi1>
    %cst = arith.constant 0.000000e+00 : f32
    %17 = vector.broadcast %cst : f32 to vector<10x16x4xf32>
    %18 = arith.select %16, %6, %17 : vector<10x16x4xi1>, vector<10x16x4xf32>
    %c0_11 = arith.constant 0 : index
    %c0_12 = arith.constant 0 : index
    %19 = vector.load %arg5[%c0_11, %c0_12] : memref<9x4xf32, #tpu.memory_space<vmem>>, vector<9x4xf32>
    %cst_13 = arith.constant 0.000000e+00 : f32
    %20 = vector.broadcast %cst_13 : f32 to vector<8x16x4xf32>
    %21 = vector.extract_strided_slice %18 {offsets = [0, 0, 0], sizes = [8, 16, 4], strides = [1, 1, 1]} : vector<10x16x4xf32> to vector<8x16x4xf32>
    %cst_14 = arith.constant 0.000000e+00 : f32
    %22 = vector.broadcast %cst_14 : f32 to vector<8x1x4xf32>
    %23 = vector.extract_strided_slice %21 {offsets = [0, 0, 0], sizes = [8, 15, 4], strides = [1, 1, 1]} : vector<8x16x4xf32> to vector<8x15x4xf32>
    %24 = tpu.concatenate %22, %23 in 1 : vector<8x1x4xf32>, vector<8x15x4xf32> -> vector<8x16x4xf32>
    %25 = vector.extract_strided_slice %19 {offsets = [0, 0], sizes = [1, 4], strides = [1, 1]} : vector<9x4xf32> to vector<1x4xf32>
    %26 = vector.shape_cast %25 : vector<1x4xf32> to vector<4xf32>
    %27 = vector.shape_cast %26 : vector<4xf32> to vector<1x1x4xf32>
    %28 = vector.broadcast %27 : vector<1x1x4xf32> to vector<8x16x4xf32>
    %29 = arith.mulf %24, %28 : vector<8x16x4xf32>
    %30 = arith.addf %20, %29 : vector<8x16x4xf32>
    %31 = vector.extract_strided_slice %19 {offsets = [1, 0], sizes = [1, 4], strides = [1, 1]} : vector<9x4xf32> to vector<1x4xf32>
    %32 = vector.shape_cast %31 : vector<1x4xf32> to vector<4xf32>
    %33 = vector.shape_cast %32 : vector<4xf32> to vector<1x1x4xf32>
    %34 = vector.broadcast %33 : vector<1x1x4xf32> to vector<8x16x4xf32>
    %35 = arith.mulf %21, %34 : vector<8x16x4xf32>
    %36 = arith.addf %30, %35 : vector<8x16x4xf32>
    %37 = vector.extract_strided_slice %21 {offsets = [0, 1, 0], sizes = [8, 15, 4], strides = [1, 1, 1]} : vector<8x16x4xf32> to vector<8x15x4xf32>
    %cst_15 = arith.constant 0.000000e+00 : f32
    %38 = vector.broadcast %cst_15 : f32 to vector<8x1x4xf32>
    %39 = tpu.concatenate %37, %38 in 1 : vector<8x15x4xf32>, vector<8x1x4xf32> -> vector<8x16x4xf32>
    %40 = vector.extract_strided_slice %19 {offsets = [2, 0], sizes = [1, 4], strides = [1, 1]} : vector<9x4xf32> to vector<1x4xf32>
    %41 = vector.shape_cast %40 : vector<1x4xf32> to vector<4xf32>
    %42 = vector.shape_cast %41 : vector<4xf32> to vector<1x1x4xf32>
    %43 = vector.broadcast %42 : vector<1x1x4xf32> to vector<8x16x4xf32>
    %44 = arith.mulf %39, %43 : vector<8x16x4xf32>
    %45 = arith.addf %36, %44 : vector<8x16x4xf32>
    %46 = vector.extract_strided_slice %18 {offsets = [1, 0, 0], sizes = [8, 16, 4], strides = [1, 1, 1]} : vector<10x16x4xf32> to vector<8x16x4xf32>
    %cst_16 = arith.constant 0.000000e+00 : f32
    %47 = vector.broadcast %cst_16 : f32 to vector<8x1x4xf32>
    %48 = vector.extract_strided_slice %46 {offsets = [0, 0, 0], sizes = [8, 15, 4], strides = [1, 1, 1]} : vector<8x16x4xf32> to vector<8x15x4xf32>
    %49 = tpu.concatenate %47, %48 in 1 : vector<8x1x4xf32>, vector<8x15x4xf32> -> vector<8x16x4xf32>
    %50 = vector.extract_strided_slice %19 {offsets = [3, 0], sizes = [1, 4], strides = [1, 1]} : vector<9x4xf32> to vector<1x4xf32>
    %51 = vector.shape_cast %50 : vector<1x4xf32> to vector<4xf32>
    %52 = vector.shape_cast %51 : vector<4xf32> to vector<1x1x4xf32>
    %53 = vector.broadcast %52 : vector<1x1x4xf32> to vector<8x16x4xf32>
    %54 = arith.mulf %49, %53 : vector<8x16x4xf32>
    %55 = arith.addf %45, %54 : vector<8x16x4xf32>
    %56 = vector.extract_strided_slice %19 {offsets = [4, 0], sizes = [1, 4], strides = [1, 1]} : vector<9x4xf32> to vector<1x4xf32>
    %57 = vector.shape_cast %56 : vector<1x4xf32> to vector<4xf32>
    %58 = vector.shape_cast %57 : vector<4xf32> to vector<1x1x4xf32>
    %59 = vector.broadcast %58 : vector<1x1x4xf32> to vector<8x16x4xf32>
    %60 = arith.mulf %46, %59 : vector<8x16x4xf32>
    %61 = arith.addf %55, %60 : vector<8x16x4xf32>
    %62 = vector.extract_strided_slice %46 {offsets = [0, 1, 0], sizes = [8, 15, 4], strides = [1, 1, 1]} : vector<8x16x4xf32> to vector<8x15x4xf32>
    %cst_17 = arith.constant 0.000000e+00 : f32
    %63 = vector.broadcast %cst_17 : f32 to vector<8x1x4xf32>
    %64 = tpu.concatenate %62, %63 in 1 : vector<8x15x4xf32>, vector<8x1x4xf32> -> vector<8x16x4xf32>
    %65 = vector.extract_strided_slice %19 {offsets = [5, 0], sizes = [1, 4], strides = [1, 1]} : vector<9x4xf32> to vector<1x4xf32>
    %66 = vector.shape_cast %65 : vector<1x4xf32> to vector<4xf32>
    %67 = vector.shape_cast %66 : vector<4xf32> to vector<1x1x4xf32>
    %68 = vector.broadcast %67 : vector<1x1x4xf32> to vector<8x16x4xf32>
    %69 = arith.mulf %64, %68 : vector<8x16x4xf32>
    %70 = arith.addf %61, %69 : vector<8x16x4xf32>
    %71 = vector.extract_strided_slice %18 {offsets = [2, 0, 0], sizes = [8, 16, 4], strides = [1, 1, 1]} : vector<10x16x4xf32> to vector<8x16x4xf32>
    %cst_18 = arith.constant 0.000000e+00 : f32
    %72 = vector.broadcast %cst_18 : f32 to vector<8x1x4xf32>
    %73 = vector.extract_strided_slice %71 {offsets = [0, 0, 0], sizes = [8, 15, 4], strides = [1, 1, 1]} : vector<8x16x4xf32> to vector<8x15x4xf32>
    %74 = tpu.concatenate %72, %73 in 1 : vector<8x1x4xf32>, vector<8x15x4xf32> -> vector<8x16x4xf32>
    %75 = vector.extract_strided_slice %19 {offsets = [6, 0], sizes = [1, 4], strides = [1, 1]} : vector<9x4xf32> to vector<1x4xf32>
    %76 = vector.shape_cast %75 : vector<1x4xf32> to vector<4xf32>
    %77 = vector.shape_cast %76 : vector<4xf32> to vector<1x1x4xf32>
    %78 = vector.broadcast %77 : vector<1x1x4xf32> to vector<8x16x4xf32>
    %79 = arith.mulf %74, %78 : vector<8x16x4xf32>
    %80 = arith.addf %70, %79 : vector<8x16x4xf32>
    %81 = vector.extract_strided_slice %19 {offsets = [7, 0], sizes = [1, 4], strides = [1, 1]} : vector<9x4xf32> to vector<1x4xf32>
    %82 = vector.shape_cast %81 : vector<1x4xf32> to vector<4xf32>
    %83 = vector.shape_cast %82 : vector<4xf32> to vector<1x1x4xf32>
    %84 = vector.broadcast %83 : vector<1x1x4xf32> to vector<8x16x4xf32>
    %85 = arith.mulf %71, %84 : vector<8x16x4xf32>
    %86 = arith.addf %80, %85 : vector<8x16x4xf32>
    %87 = vector.extract_strided_slice %71 {offsets = [0, 1, 0], sizes = [8, 15, 4], strides = [1, 1, 1]} : vector<8x16x4xf32> to vector<8x15x4xf32>
    %cst_19 = arith.constant 0.000000e+00 : f32
    %88 = vector.broadcast %cst_19 : f32 to vector<8x1x4xf32>
    %89 = tpu.concatenate %87, %88 in 1 : vector<8x15x4xf32>, vector<8x1x4xf32> -> vector<8x16x4xf32>
    %90 = vector.extract_strided_slice %19 {offsets = [8, 0], sizes = [1, 4], strides = [1, 1]} : vector<9x4xf32> to vector<1x4xf32>
    %91 = vector.shape_cast %90 : vector<1x4xf32> to vector<4xf32>
    %92 = vector.shape_cast %91 : vector<4xf32> to vector<1x1x4xf32>
    %93 = vector.broadcast %92 : vector<1x1x4xf32> to vector<8x16x4xf32>
    %94 = arith.mulf %89, %93 : vector<8x16x4xf32>
    %95 = arith.addf %86, %94 : vector<8x16x4xf32>
    %c0_20 = arith.constant 0 : index
    %c0_21 = arith.constant 0 : index
    %96 = vector.load %arg6[%c0_20, %c0_21] : memref<1x4xf32, #tpu.memory_space<vmem>>, vector<1x4xf32>
    %97 = vector.shape_cast %96 : vector<1x4xf32> to vector<4xf32>
    %98 = vector.shape_cast %97 : vector<4xf32> to vector<1x1x4xf32>
    %99 = vector.broadcast %98 : vector<1x1x4xf32> to vector<8x16x4xf32>
    %100 = arith.mulf %95, %99 : vector<8x16x4xf32>
    %c0_22 = arith.constant 0 : index
    %c0_23 = arith.constant 0 : index
    %101 = vector.load %arg7[%c0_22, %c0_23] : memref<1x4xf32, #tpu.memory_space<vmem>>, vector<1x4xf32>
    %102 = vector.shape_cast %101 : vector<1x4xf32> to vector<4xf32>
    %103 = vector.shape_cast %102 : vector<4xf32> to vector<1x1x4xf32>
    %104 = vector.broadcast %103 : vector<1x1x4xf32> to vector<8x16x4xf32>
    %105 = arith.addf %100, %104 : vector<8x16x4xf32>
    %106 = arith.negf %105 : vector<8x16x4xf32>
    %107 = math.exp %106 : vector<8x16x4xf32>
    %cst_24 = arith.constant 1.000000e+00 : f32
    %108 = vector.broadcast %cst_24 : f32 to vector<8x16x4xf32>
    %109 = arith.addf %108, %107 : vector<8x16x4xf32>
    %110 = arith.divf %108, %109 : vector<8x16x4xf32>
    %111 = arith.mulf %105, %110 : vector<8x16x4xf32>
    %c0_25 = arith.constant 0 : index
    %c0_26 = arith.constant 0 : index
    %c0_27 = arith.constant 0 : index
    %c0_28 = arith.constant 0 : index
    %112 = vector.load %arg8[%c0_25, %c0_26, %c0_27, %c0_28] : memref<1x8x16x4xf32, #tpu.memory_space<vmem>>, vector<1x8x16x4xf32>
    %113 = vector.shape_cast %112 : vector<1x8x16x4xf32> to vector<8x16x4xf32>
    %114 = vector.shape_cast %111 : vector<8x16x4xf32> to vector<1x8x16x4xf32>
    tpu.vector_store %arg8[%c0_25, %c0_26, %c0_27, %c0_28], %114 {strides = array<i32>} : memref<1x8x16x4xf32, #tpu.memory_space<vmem>>, vector<1x8x16x4xf32>,
    %cst_29 = arith.constant dense<0.000000e+00> : vector<16x4xf32>
    %115 = vector.multi_reduction <add>, %111, %cst_29 [0] : vector<8x16x4xf32> to vector<16x4xf32>
    %cst_30 = arith.constant dense<0.000000e+00> : vector<4xf32>
    %116 = vector.multi_reduction <add>, %115, %cst_30 [0] : vector<16x4xf32> to vector<4xf32>
    %117 = vector.shape_cast %116 : vector<4xf32> to vector<1x4xf32>
    %c0_31 = arith.constant 0 : index
    %c0_32 = arith.constant 0 : index
    %c0_33 = arith.constant 0 : index
    %c0_34 = arith.constant 0 : index
    %118 = vector.load %arg9[%c0_31, %c0_32, %c0_33, %c0_34] : memref<1x1x1x4xf32, #tpu.memory_space<vmem>>, vector<1x1x1x4xf32>
    %119 = vector.shape_cast %118 : vector<1x1x1x4xf32> to vector<1x4xf32>
    %120 = vector.shape_cast %117 : vector<1x4xf32> to vector<1x1x1x4xf32>
    tpu.vector_store %arg9[%c0_31, %c0_32, %c0_33, %c0_34], %120 {strides = array<i32>} : memref<1x1x1x4xf32, #tpu.memory_space<vmem>>, vector<1x1x1x4xf32>,
    return
  }
  func.func @transform_0(%arg0: i32, %arg1: i32) -> (i32, i32, i32, i32) {
    %c0_i32 = arith.constant 0 : i32
    %c0_i32_0 = arith.constant 0 : i32
    %c0_i32_1 = arith.constant 0 : i32
    return %arg0, %arg1, %c0_i32, %c0_i32_0 : i32, i32, i32, i32
  }
  func.func @transform_1(%arg0: i32, %arg1: i32) -> (i32, i32, i32, i32) {
    %c8_i32 = arith.constant 8 : i32
    %0 = arith.muli %arg1, %c8_i32 : i32
    %c1_i32 = arith.constant 1 : i32
    %1 = arith.subi %0, %c1_i32 : i32
    %c0_i32 = arith.constant 0 : i32
    %2 = arith.maxsi %1, %c0_i32 : i32
    %c0_i32_0 = arith.constant 0 : i32
    %c0_i32_1 = arith.constant 0 : i32
    %c0_i32_2 = arith.constant 0 : i32
    return %arg0, %2, %c0_i32_0, %c0_i32_1 : i32, i32, i32, i32
  }
  func.func @transform_2(%arg0: i32, %arg1: i32) -> (i32, i32, i32, i32) {
    %c1_i32 = arith.constant 1 : i32
    %0 = arith.addi %arg1, %c1_i32 : i32
    %c8_i32 = arith.constant 8 : i32
    %1 = arith.muli %0, %c8_i32 : i32
    %c15_i32 = arith.constant 15 : i32
    %2 = arith.minsi %1, %c15_i32 : i32
    %c0_i32 = arith.constant 0 : i32
    %c0_i32_0 = arith.constant 0 : i32
    %c0_i32_1 = arith.constant 0 : i32
    return %arg0, %2, %c0_i32, %c0_i32_0 : i32, i32, i32, i32
  }
  func.func @transform_3(%arg0: i32, %arg1: i32) -> (i32, i32) {
    %c0_i32 = arith.constant 0 : i32
    %c0_i32_0 = arith.constant 0 : i32
    %c0_i32_1 = arith.constant 0 : i32
    return %c0_i32, %c0_i32_0 : i32, i32
  }
  func.func @transform_4(%arg0: i32, %arg1: i32) -> (i32, i32) {
    %c0_i32 = arith.constant 0 : i32
    %c0_i32_0 = arith.constant 0 : i32
    %c0_i32_1 = arith.constant 0 : i32
    return %c0_i32, %c0_i32_0 : i32, i32
  }
  func.func @transform_5(%arg0: i32, %arg1: i32) -> (i32, i32) {
    %c0_i32 = arith.constant 0 : i32
    %c0_i32_0 = arith.constant 0 : i32
    %c0_i32_1 = arith.constant 0 : i32
    return %c0_i32, %c0_i32_0 : i32, i32
  }
  func.func @transform_6(%arg0: i32, %arg1: i32) -> (i32, i32, i32, i32) {
    %c0_i32 = arith.constant 0 : i32
    %c0_i32_0 = arith.constant 0 : i32
    %c0_i32_1 = arith.constant 0 : i32
    return %arg0, %arg1, %c0_i32, %c0_i32_0 : i32, i32, i32, i32
  }
  func.func @transform_7(%arg0: i32, %arg1: i32) -> (i32, i32, i32, i32) {
    %c0_i32 = arith.constant 0 : i32
    %c0_i32_0 = arith.constant 0 : i32
    %c0_i32_1 = arith.constant 0 : i32
    return %arg0, %arg1, %c0_i32, %c0_i32_0 : i32, i32, i32, i32
  }
}

</mosaic_0001>

<bundles_post_ra>
// kernel: tpu_custom_call.1
= control target key start
LH: loop header
LB: loop body
LE: loop exit
PB: predicated region body
PF: predicated region fallthrough
CT: control target
= control target key end

     0   :  { %13 = vsyncpa [#allocation3], 0  ;;  %s2692_s0 = inlined_call_operand.vmem [shape: f32[2,16,16,4], index: 0, kind: input, shape index: {}]   ;;  %s2693_s1 = inlined_call_operand.vmem [shape: f32[2,16,16,4], index: 1, kind: input, shape index: {}]   ;;  %s2694_s2 = inlined_call_operand.vmem [shape: f32[2,16,16,4], index: 2, kind: input, shape index: {}]   ;;  %s2695_s3 = inlined_call_operand.vmem [shape: f32[9,4], index: 3, kind: input, shape index: {}]   ;;  %s2696_s4 = inlined_call_operand.vmem [shape: f32[1,4], index: 4, kind: input, shape index: {}]   ;;  %s2697_s5 = inlined_call_operand.vmem [shape: f32[1,4], index: 5, kind: input, shape index: {}]   ;;  %s2698_s6 = inlined_call_operand.vmem [shape: f32[2,16,16,4], index: 6, kind: output, shape index: {0}]   ;;  %s2699_s7 = inlined_call_operand.hbm [shape: f32[2,2,1,4], index: 7, kind: output, shape index: {1}]  }
   0x1   :  { %15 = vsyncpa [#allocation3 + $0x1], 0  ;;  %s1756_s24 = smov 0   ;;  %s1758_s25 = smov 0  }
   0x2   :  { %s1760_s26 = smov 0   ;;  %s1762_s27 = smov 0  }
   0x3   :  { %s1764_s28 = smov 0   ;;  %s1766_s29 = smov 0  }
   0x4   :  { %s1768_s30 = smov 0   ;;  %s1770_s8 = smov 0  }
   0x5 LB: > { %s1415_s9 = sadd.s32 4294967295, %s1713_s8   ;;  %s1416_s10 = sadd.s32 4294967294, %s1713_s8   ;;  %s1713_s8 = sphi %s1770_s8, %s21_s8   ;;  %s1709_s30 = sphi %s1768_s30, %s2930_s30   ;;  %s1705_s29 = sphi %s1766_s29, %s2929_s29   ;;  %s1701_s28 = sphi %s1764_s28, %s2928_s28   ;;  %s1697_s27 = sphi %s1762_s27, %s2927_s27   ;;  %s1693_s26 = sphi %s1760_s26, %s2926_s26   ;;  %s1689_s25 = sphi %s1758_s25, %s2925_s25   ;;  %s1685_s24 = sphi %s1756_s24, %s2924_s24  }
   0x6   : > { %s30_s11 = sadd.s32 1, %s1705_s29  ;;  %s33_s12 = sadd.s32 1, %s1709_s30 }
   0x7   : > { %p31_p0 = scmp.ge.s32.totalorder %s30_s11, 2  ;;  %p243_p1 = scmp.ne.s32.totalorder %s1693_s26, %s1689_s25 }
   0x8   : > { %p244_p2 = scmp.eq.s32.totalorder %s1415_s9, 3  ;;  %p249_p5 = scmp.ne.s32.totalorder %s1689_s25, %s1685_s24 }
   0x9   : > { %s2932_s11 = smov (%p31_p0, %s30_s11), 0  ;;  %s2934_s12 = smov (!%p31_p0, %s33_s12), %s1709_s30 }
   0xa   : > { %s229_s13 = ssub.s32 %s1705_s29, %s2932_s11  ;;  %p1807_p3 = por %p244_p2, %p243_p1 }
   0xb   : > { %p35_p4 = scmp.ge.s32.totalorder %s2934_s12, 2  ;;  %p250_p6 = scmp.eq.s32.totalorder %s1416_s10, 3 }
   0xc   : > { %p1425_p7 = scmp.ge.s32.totalorder %s1713_s8, 1  ;;  %p331_p9 = scmp.lt.s32.totalorder %s1713_s8, 5 }
   0xd   : > { %s2936_s12 = smov (%p35_p4, %s2934_s12), 0  ;;  %p1816_p8 = por %p250_p6, %p249_p5 }
   0xe   : > { %s228_s16 = ssub.s32 %s1709_s30, %s2936_s12  ;;  %s233_s17 = sadd.s32 1, %s1693_s26 }
   0xf   : > { %s230_s18 = sor.u32 %s229_s13, %s228_s16  ;;  %p332_p10 = pnand %p1425_p7, %p331_p9 }
  0x10   : > { %p231_p11 = scmp.eq.s32.totalorder %s230_s18, 0 }
  0x11   : > { %335 = sbr.rel (%p332_p10) target bundleno = 216 (0xd8), region = 44 }
  0x12   : > { %s1825_s19 = scalar_select %p231_p11, %s1693_s26, %s233_s17  }
  0x18   : > { %s1426_s20 = sshll.u32 %s1697_s27, 3  ;;  %p404_p12 = scmp.lt.s32.totalorder %s1701_s28, 1  ;;  %v608_v1 = vlaneseq  ;;  %v1878_v12 = vld [vmem:[%s2695_s3] sm:$0xff] }
  0x19   : > { %p406_p13 = scmp.lt.s32.totalorder %s1426_s20, 15  ;;  %s1829_s21 = sadd.s32 4294967295, %s1426_s20  ;;  %2783 = vst [vmem:[#allocation6_spill] sm:$0xff] %v1878_v12 }
  0x1a   : > { %s405_s22 = scalar_select %p404_p12, %s1701_s28, 1  ;;  %v481_v0 = vstv %s1829_s21  ;;  %v1856_v8 = vshrl.u32 %v608_v1, 7 }
  0x1b   : > { %s407_s23 = scalar_select %p406_p13, %s1426_s20, 15  ;;  %v482_v2 = vadd.s32 1, %v481_v0  ;;  %v483_v3 = vadd.s32 2, %v481_v0  ;;  %v484_v4 = vadd.s32 3, %v481_v0  ;;  %v485_v5 = vadd.s32 4, %v481_v0 }
  0x1c   : > { %s1833_s9 = sshll.u32 %s405_s22, 5  ;;  %p416_p0 = scmp.gt.s32.totalorder %s1829_s21, 0  ;;  %v1852_v6 = vadd.s32 5, %v481_v0  ;;  %v1854_v7 = vadd.s32 6, %v481_v0  ;;  %2782 = vst [vmem:[#allocation5_spill] sm:$0xff] %v1856_v8  ;;  %v1861_v9 = vadd.s32 7, %v481_v0 }
  0x1d   : > { %s1427_s10 = sshll.u32 %s407_s23, 1  ;;  %p1432_p1 = scmp.lt.s32.totalorder %s1829_s21, 15  ;;  %v1863_v10 = vadd.s32 8, %v481_v0  ;;  %v1867_v11 = vadd.s32 9, %v481_v0  ;;  %vm491_vm0 = vcmp.ge.s32.totalorder %v481_v0, 0  ;;  %vm492_vm1 = vcmp.ge.s32.totalorder %v482_v2, 0 }
  0x1e   : > { %s1838_s13 = sadd.s32 %s1833_s9, %s1427_s10  ;;  %s1483_s16 = sadd.s32 8, %s1426_s20  ;;  %vm501_vm2 = vcmp.lt.s32.totalorder %v481_v0, 16  ;;  %vm493_vm3 = vcmp.ge.s32.totalorder %v483_v3, 0  ;;  %vm494_vm4 = vcmp.ge.s32.totalorder %v484_v4, 0  ;;  %vm495_vm5 = vcmp.ge.s32.totalorder %v485_v5, 0 }
  0x1f   : > { %s1429_s17 = sshll.u32 %s1838_s13, 3  ;;  %p1841_p2 = scmp.lt.s32.totalorder %s1483_s16, 15  ;;  %vm502_vm6 = vcmp.lt.s32.totalorder %v482_v2, 16  ;;  %vm496_vm7 = vcmp.ge.s32.totalorder %v1852_v6, 0  ;;  %vm497_vm8 = vcmp.ge.s32.totalorder %v1854_v7, 0  ;;  %vm503_vm9 = vcmp.lt.s32.totalorder %v483_v3, 16  ;;  %vm1887_vm13 = vmand %vm491_vm0, %vm501_vm2 }
  0x20   : > { %s1850_s10 = scalar_lea.vmem %s2692_s0, %s1429_s17  ;;  %v610_v13 = vsub.s32 0, %v1856_v8  ;;  %vm504_vm12 = vcmp.lt.s32.totalorder %v484_v4, 16  ;;  %vm505_vm14 = vcmp.lt.s32.totalorder %v485_v5, 16  ;;  %vm1898_vm15 = vmand %vm492_vm1, %vm502_vm6  ;;  %v646_v20 = vsub.s32 1, %v1856_v8  ;;  %s401_s13 = sand.u32 1, %s1689_s25  }
  0x21   : > { %s417_s20 = scalar_select %p416_p0, %s1829_s21, 0  ;;  %v461_v14 = vld [vmem:[%s1850_s10] sm:$0xff]  ;;  %v462_v15 = vld [vmem:[%s1850_s10 + $0x8] sm:$0xff]  ;;  %v463_v17 = vld [vmem:[%s1850_s10 + $0x10] sm:$0xff]  ;;  %v731_v21 = vsub.s32 2, %v1856_v8  ;;  %vm506_vm2 = vcmp.lt.s32.totalorder %v1852_v6, 16 }
  0x22   : > { %s2938_s16 = smov (!%p1841_p2, %s1483_s16), 15  ;;  %v464_v18 = vld [vmem:[%s1850_s10 + $0x18] sm:$0xff]  ;;  %v465_v22 = vld [vmem:[%s1850_s10 + $0x20] sm:$0xff]  ;;  %v466_v23 = vld [vmem:[%s1850_s10 + $0x28] sm:$0xff]  ;;  %vm507_vm11 = vcmp.lt.s32.totalorder %v1854_v7, 16  ;;  %vm509_vm0 = vcmp.lt.s32.totalorder %v1863_v10, 16  ;;  %v1932_v28 = vrot.slane %v1878_v12, %v610_v13  ;;  %v1970_v42 = vrot.slane %v1878_v12, %v646_v20 }
  0x23   : > { %s2940_s20 = smov (!%p1432_p1, %s417_s20), 15  ;;  %s2942_s16 = smov (!%p1841_p2, %s2938_s16), 15  ;;  %vm1911_vm1 = vmand %vm493_vm3, %vm503_vm9  ;;  %v467_v25 = vld [vmem:[%s1850_s10 + $0x30] sm:$0xff]  ;;  %v468_v26 = vld [vmem:[%s1850_s10 + $0x38] sm:$0xff]  ;;  %vm510_vm10 = vcmp.lt.s32.totalorder %v1867_v11, 16  ;;  %vm559_vm9 = vcmask 1040384   ;;  %v1973_v43 = vrot.slane %v1878_v12, %v731_v21 }
  0x24   : > { %s1437_s21 = sshll.u32 %s2940_s20, 1  ;;  %s1892_s22 = sshll.u32 %s2942_s16, 1  ;;  %vm1927_vm3 = vmand %vm494_vm4, %vm504_vm12  ;;  %v469_v31 = vld [vmem:[%s1850_s10 + $0x40] sm:$0xff]  ;;  %v1943_v33 = vsel %vm1898_vm15, %v461_v14, 0.0  ;;  %v1947_v34 = vsel %vm1898_vm15, %v462_v15, 0.0  ;;  %v775_v35 = vsub.s32 3, %v1856_v8 }
  0x25   : > { %s424_s18 = sadd.s32 %s1437_s21, %s1833_s9  ;;  %vm1937_vm6 = vmand %vm495_vm5, %vm505_vm14  ;;  %v811_v36 = vsub.s32 4, %v1856_v8  ;;  %v470_v37 = vld [vmem:[%s1850_s10 + $0x48] sm:$0xff]  ;;  %v471_v38 = vld [vmem:[%s1850_s10 + $0x50] sm:$0xff]  ;;  %v1963_v40 = vsel %vm1911_vm1, %v463_v17, 0.0  ;;  %v1967_v41 = vsel %vm1911_vm1, %v464_v18, 0.0  ;;  %v2006_v53 = vsel %vm1927_vm3, %v465_v22, 0.0 }
  0x26   : > { %s1439_s20 = sshll.u32 %s424_s18, 3  ;;  %s441_s18 = sadd.s32 %s1892_s22, %s1833_s9  ;;  %vm1957_vm4 = vmand %vm496_vm7, %vm506_vm2  ;;  %v472_v44 = vld [vmem:[%s1850_s10 + $0x58] sm:$0xff]  ;;  %v473_v50 = vld [vmem:[%s1850_s10 + $0x60] sm:$0xff]  ;;  %vm2798_vm7 = vcmp.lt.s32.totalorder %v1861_v9, 16  ;;  %2802 = vst [vmem:[#allocation7_spill] sm:$0xff] %v2006_v53  ;;  %v2010_v54 = vsel %vm1927_vm3, %v466_v23, 0.0  ;;  %v2066_v14 = vrot.slane %v1878_v12, %v775_v35  ;;  %v653_v49 = vmul.f32 %v1970_v42, %v1967_v41 }
  0x27   : > { %s426_s21 = scalar_lea.vmem %s2693_s1, %s1439_s20  ;;  %s1446_s9 = sshll.u32 %s441_s18, 3  ;;  %vm1980_vm5 = vmand %vm497_vm8, %vm507_vm11  ;;  %v474_v51 = vld [vmem:[%s1850_s10 + $0x68] sm:$0xff]  ;;  %vm2799_vm8 = vcmp.ge.s32.totalorder %v1861_v9, 0  ;;  %2803 = vst [vmem:[#allocation8_spill] sm:$0xff] %v2010_v54  ;;  %v563_v55 = vrot.slane %v1943_v33, 7  ;;  %v564_v56 = vrot.slane %v1947_v34, 7  ;;  %v2069_v15 = vrot.slane %v1878_v12, %v811_v36 }
  0x28   : > { %v459_v29 = vld [vmem:[%s426_s21] sm:$0xff]  ;;  %v460_v30 = vld [vmem:[%s426_s21 + $0x8] sm:$0xff]  ;;  %vm2000_vm11 = vmand %vm2799_vm8, %vm2798_vm7  ;;  %v2016_v57 = vsel %vm1937_vm6, %v467_v25, 0.0  ;;  %v2020_v58 = vsel %vm1937_vm6, %v468_v26, 0.0  ;;  %v566_v59 = vrot.slane %v1963_v40, 7  ;;  %v567_v60 = vrot.slane %v1967_v41, 7  ;;  %s443_s16 = scalar_lea.vmem %s2694_s2, %s1446_s9 }
  0x29   : > { %v1986_v46 = vsel %vm1887_vm13, %v459_v29, 0.0  ;;  %v1990_v47 = vsel %vm1887_vm13, %v460_v30, 0.0  ;;  %2804 = vst [vmem:[#allocation9_spill] sm:$0xff] %v2016_v57  ;;  %2805 = vst [vmem:[#allocation10_spill] sm:$0xff] %v2020_v58  ;;  %v2029_v61 = vsel %vm1957_vm4, %v469_v31, 0.0  ;;  %v2033_v62 = vsel %vm1957_vm4, %v470_v37, 0.0 }
  0x2a   : > { %2806 = vst [vmem:[#allocation11_spill] sm:$0xff] %v2029_v61  ;;  %2807 = vst [vmem:[#allocation12_spill] sm:$0xff] %v2033_v62  ;;  %v560_v63 = vrot.slane %v1986_v46, 7  ;;  %v561_v0 = vrot.slane %v1990_v47, 7  ;;  %v2039_v1 = vsel %vm1980_vm5, %v471_v38, 0.0  ;;  %v2043_v2 = vsel %vm1980_vm5, %v472_v44, 0.0 }
  0x2b   : > { %2808 = vst [vmem:[#allocation13_spill] sm:$0xff] %v2039_v1  ;;  %2809 = vst [vmem:[#allocation14_spill] sm:$0xff] %v2043_v2  ;;  %v2047_v3 = vsel %vm2000_vm11, %v473_v50, 0.0  ;;  %v2051_v4 = vsel %vm2000_vm11, %v474_v51, 0.0  ;;  %v475_v5 = vld [vmem:[%s1850_s10 + $0x70] sm:$0xff]  ;;  %v476_v6 = vld [vmem:[%s1850_s10 + $0x78] sm:$0xff]  ;;  %v2089_v26 = vsel %vm559_vm9, %v563_v55, %v564_v56  ;;  %v2092_v27 = vsel %vm559_vm9, %v566_v59, %v567_v60  ;;  %s2565_s10 = scalar_lea.vmem %s2698_s6, %s1429_s17 }
  0x2c   : > { %2810 = vst [vmem:[#allocation15_spill] sm:$0xff] %v2047_v3  ;;  %2811 = vst [vmem:[#allocation16_spill] sm:$0xff] %v2051_v4  ;;  %vm2812_vm12 = vcmp.ge.s32.totalorder %v1863_v10, 0  ;;  %v569_v9 = vrot.slane %v2006_v53, 7  ;;  %v570_v13 = vrot.slane %v2010_v54, 7  ;;  %v477_v16 = vld [vmem:[%s443_s16] sm:$0xff]  ;;  %v562_v25 = vsel %vm559_vm9, %v560_v63, %v561_v0 }
  0x2d   : > { %vm2059_vm13 = vmand %vm2812_vm12, %vm509_vm0  ;;  %2815 = vst [vmem:[#allocation17_spill] sm:$0xff] %v2069_v15  ;;  %v478_v17 = vld [vmem:[%s443_s16 + $0x8] sm:$0xff]  ;;  %vm2816_vm14 = vcmp.ge.s32.totalorder %v1867_v11, 0  ;;  %v572_v10 = vrot.slane %v2016_v57, 7  ;;  %v573_v18 = vrot.slane %v2020_v58, 7  ;;  %v575_v19 = vrot.slane %v2029_v61, 7 }
  0x2e   : > { %vm520_vm15 = vmand %vm2816_vm14, %vm510_vm10  ;;  %v576_v20 = vrot.slane %v2033_v62, 7  ;;  %v578_v21 = vrot.slane %v2039_v1, 7  ;;  %v579_v22 = vrot.slane %v2043_v2, 7  ;;  %v581_v23 = vrot.slane %v2047_v3, 7  ;;  %2818 = vst [vmem:[#allocation19_spill] sm:$0xff] %v2089_v26  ;;  %s1472_s17 = sshll.u32 %s1701_s28, 1 }
  0x2f   : > { %v582_v24 = vrot.slane %v2051_v4, 7  ;;  %v2085_v11 = vsel %vm2059_vm13, %v475_v5, 0.0  ;;  %2819 = vst [vmem:[#allocation20_spill] sm:$0xff] %v2092_v27  ;;  %v2096_v29 = vsel %vm2059_vm13, %v476_v6, 0.0  ;;  %v2098_v30 = vsel %vm520_vm15, %v477_v16, 0.0  ;;  %s1250_s23 = sadd.s32 %s1697_s27, %s1472_s17  ;;  %s402_s21 = scalar_lea.vmem [#allocation2], %s401_s13 }
  0x30   : > { %2817 = vst [vmem:[#allocation18_spill] sm:$0xff] %v2085_v11  ;;  %2820 = vst [vmem:[#allocation21_spill] sm:$0xff] %v2096_v29  ;;  %v2100_v31 = vsel %vm520_vm15, %v478_v17, 0.0  ;;  %v2103_v32 = vsel %vm559_vm9, %v569_v9, %v570_v13  ;;  %v2106_v35 = vsel %vm559_vm9, %v572_v10, %v573_v18  ;;  %v2109_v36 = vsel %vm559_vm9, %v575_v19, %v576_v20  ;;  %s1254_s18 = sshll.u32 %s402_s21, 4  ;;  %s1473_s9 = sshll.u32 %s1250_s23, 4  ;;  %s2636_s18 = int_to_ptr.vmem [resolvable:$true] %s1254_s18 }
  0x31   : > { %2821 = vst [vmem:[#allocation22_spill] sm:$0xff] %v2098_v30  ;;  %2822 = vst [vmem:[#allocation23_spill] sm:$0xff] %v2100_v31  ;;  %v600_v37 = vsel %vm559_vm9, 0.0, %v560_v63  ;;  %v2113_v38 = vsel %vm559_vm9, 0.0, %v563_v55  ;;  %v2116_v39 = vsel %vm559_vm9, %v578_v21, %v579_v22  ;;  %v2119_v44 = vsel %vm559_vm9, %v581_v23, %v582_v24  ;;  %s2641_s28 = scalar_lea.hbm %s2699_s7, %s1473_s9  ;;  %s1236_s16 = scalar_lea.sflag [#allocation3], %s401_s13 }
  0x32   : > { %2823 = vst [vmem:[#allocation24_spill] sm:$0xff] %v2103_v32  ;;  %2824 = vst [vmem:[#allocation25_spill] sm:$0xff] %v2106_v35  ;;  %v2122_v45 = vsel %vm559_vm9, 0.0, %v566_v59  ;;  %v2125_v50 = vsel %vm559_vm9, 0.0, %v569_v9  ;;  %v2128_v51 = vsel %vm559_vm9, 0.0, %v572_v10  ;;  %v2131_v52 = vsel %vm559_vm9, 0.0, %v575_v19 }
  0x33   : > { %2825 = vst [vmem:[#allocation26_spill] sm:$0xff] %v2109_v36  ;;  %2826 = vst [vmem:[#allocation27_spill] sm:$0xff] %v2116_v39  ;;  %v2134_v55 = vsel %vm559_vm9, 0.0, %v578_v21  ;;  %v2137_v56 = vsel %vm559_vm9, 0.0, %v581_v23  ;;  %v612_v60 = vmul.f32 %v1932_v28, %v600_v37  ;;  %v613_v59 = vmul.f32 %v1932_v28, %v562_v25  ;;  %s1619_s27 = scalar_lea.vmem %s2636_s18, 16 }
  0x34   : > { %2827 = vst [vmem:[#allocation28_spill] sm:$0xff] %v2119_v44  ;;  %2828 = vst [vmem:[#allocation29_spill] sm:$0xff] %v2122_v45  ;;  %v614_v63 = vmul.f32 %v1932_v28, %v2113_v38  ;;  %v615_v0 = vmul.f32 %v1932_v28, %v2089_v26  ;;  %v616_v5 = vmul.f32 %v1932_v28, %v2122_v45  ;;  %vm680_vm10 = vcmask 1046528   ;;  %p1620_p4 = scmp.ne.s32.totalorder %s2636_s18, %s1619_s27 }
  0x35   : > { %2829 = vst [vmem:[#allocation30_spill] sm:$0xff] %v2125_v50  ;;  %2830 = vst [vmem:[#allocation31_spill] sm:$0xff] %v2128_v51  ;;  %v617_v6 = vmul.f32 %v1932_v28, %v2092_v27  ;;  %v618_v7 = vmul.f32 %v1932_v28, %v2125_v50  ;;  %v619_v9 = vmul.f32 %v1932_v28, %v2103_v32  ;;  %vm1167_vm0 = vcmask 31744  }
  0x36   : > { %2831 = vst [vmem:[#allocation32_spill] sm:$0xff] %v2131_v52  ;;  %2832 = vst [vmem:[#allocation33_spill] sm:$0xff] %v2134_v55  ;;  %v620_v13 = vmul.f32 %v1932_v28, %v2128_v51  ;;  %v621_v16 = vmul.f32 %v1932_v28, %v2106_v35  ;;  %v622_v17 = vmul.f32 %v1932_v28, %v2131_v52  ;;  %vm1223_vm2 = vcmask 24576   ;;  %p1621_p5 = pnand %p1620_p4, %p1807_p3 }
  0x37   : > { %2833 = vst [vmem:[#allocation34_spill] sm:$0xff] %v2137_v56  ;;  %v623_v10 = vmul.f32 %v1932_v28, %v2109_v36  ;;  %v624_v18 = vmul.f32 %v1932_v28, %v2134_v55  ;;  %v625_v19 = vmul.f32 %v1932_v28, %v2116_v39  ;;  %v626_v20 = vmul.f32 %v1932_v28, %v2137_v56 }
  0x38   : > { %v627_v21 = vmul.f32 %v1932_v28, %v2119_v44  ;;  %v648_v22 = vmul.f32 %v1970_v42, %v1986_v46  ;;  %v649_v23 = vmul.f32 %v1970_v42, %v1990_v47  ;;  %v650_v24 = vmul.f32 %v1970_v42, %v1943_v33  ;;  %p1622_p6 = pneg %p1621_p5 }
  0x39   : > { %v651_v25 = vmul.f32 %v1970_v42, %v1947_v34  ;;  %v652_v37 = vmul.f32 %v1970_v42, %v1963_v40  ;;  %v654_v28 = vmul.f32 %v1970_v42, %v2006_v53  ;;  %v655_v48 = vmul.f32 %v1970_v42, %v2010_v54 }
  0x3a   : > { %v656_v31 = vmul.f32 %v1970_v42, %v2016_v57  ;;  %v657_v30 = vmul.f32 %v1970_v42, %v2020_v58  ;;  %v658_v12 = vmul.f32 %v1970_v42, %v2029_v61  ;;  %v659_v8 = vmul.f32 %v1970_v42, %v2033_v62 }
  0x3b   : > { %v660_v15 = vmul.f32 %v1970_v42, %v2039_v1  ;;  %v661_v44 = vmul.f32 %v1970_v42, %v2043_v2  ;;  %v662_v56 = vmul.f32 %v1970_v42, %v2047_v3  ;;  %v663_v39 = vmul.f32 %v1970_v42, %v2051_v4 }
  0x3c   : > { %v2201_v55 = vadd.f32 %v648_v22, %v612_v60  ;;  %v2203_v36 = vadd.f32 %v649_v23, %v613_v59  ;;  %v2205_v52 = vadd.f32 %v650_v24, %v614_v63  ;;  %v2207_v35 = vadd.f32 %v651_v25, %v615_v0 }
  0x3d   : > { %v2209_v51 = vadd.f32 %v652_v37, %v616_v5  ;;  %v2211_v32 = vadd.f32 %v653_v49, %v617_v6  ;;  %v2213_v50 = vadd.f32 %v654_v28, %v618_v7  ;;  %v2215_v27 = vadd.f32 %v655_v48, %v619_v9 }
  0x3e   : > { %v2217_v45 = vadd.f32 %v656_v31, %v620_v13  ;;  %v2219_v26 = vadd.f32 %v657_v30, %v621_v16  ;;  %v2221_v42 = vadd.f32 %v658_v12, %v622_v17  ;;  %v2223_v60 = vadd.f32 %v659_v8, %v623_v10 }
  0x3f   : > { %v681_v59 = vrot.slane %v1986_v46, 1  ;;  %v682_v63 = vrot.slane %v1990_v47, 1  ;;  %v684_v0 = vrot.slane %v1943_v33, 1  ;;  %v685_v49 = vrot.slane %v1947_v34, 1 }
  0x40   : > { %v687_v5 = vrot.slane %v1963_v40, 1  ;;  %v688_v48 = vrot.slane %v1967_v41, 1  ;;  %v690_v31 = vrot.slane %v2006_v53, 1  ;;  %v691_v30 = vrot.slane %v2010_v54, 1 }
  0x41   : > { %v693_v12 = vrot.slane %v2016_v57, 1  ;;  %v694_v8 = vrot.slane %v2020_v58, 1  ;;  %v696_v46 = vrot.slane %v2029_v61, 1  ;;  %v697_v47 = vrot.slane %v2033_v62, 1 }
  0x42   : > { %v699_v6 = vrot.slane %v2039_v1, 1  ;;  %v700_v7 = vrot.slane %v2043_v2, 1  ;;  %v702_v9 = vrot.slane %v2047_v3, 1  ;;  %v703_v13 = vrot.slane %v2051_v4, 1 }
  0x43   : > { %v676_v16 = vadd.f32 %v660_v15, %v624_v18  ;;  %v677_v17 = vadd.f32 %v661_v44, %v625_v19  ;;  %v678_v10 = vadd.f32 %v662_v56, %v626_v20  ;;  %v679_v22 = vadd.f32 %v663_v39, %v627_v21 }
  0x44   : > { %v683_v23 = vsel %vm680_vm10, %v681_v59, %v682_v63  ;;  %v2243_v24 = vsel %vm680_vm10, %v684_v0, %v685_v49  ;;  %v2246_v25 = vsel %vm680_vm10, %v687_v5, %v688_v48  ;;  %v2249_v37 = vsel %vm680_vm10, %v690_v31, %v691_v30 }
  0x45   : > { %2834 = vst [vmem:[#allocation35_spill] sm:$0xff] %v2243_v24  ;;  %2835 = vst [vmem:[#allocation36_spill] sm:$0xff] %v2246_v25  ;;  %v2252_v28 = vsel %vm680_vm10, %v693_v12, %v694_v8  ;;  %v2255_v4 = vsel %vm680_vm10, %v696_v46, %v697_v47  ;;  %v721_v15 = vsel %vm680_vm10, %v682_v63, 0.0  ;;  %v2259_v39 = vsel %vm680_vm10, %v685_v49, 0.0 }
  0x46   : > { %2836 = vst [vmem:[#allocation37_spill] sm:$0xff] %v2249_v37  ;;  %2837 = vst [vmem:[#allocation38_spill] sm:$0xff] %v2252_v28  ;;  %v2262_v44 = vsel %vm680_vm10, %v699_v6, %v700_v7  ;;  %v2265_v56 = vsel %vm680_vm10, %v702_v9, %v703_v13  ;;  %v2268_v18 = vsel %vm680_vm10, %v688_v48, 0.0  ;;  %v2271_v19 = vsel %vm680_vm10, %v691_v30, 0.0 }
  0x47   : > { %2838 = vst [vmem:[#allocation39_spill] sm:$0xff] %v2255_v4  ;;  %2839 = vst [vmem:[#allocation40_spill] sm:$0xff] %v2259_v39  ;;  %v2274_v20 = vsel %vm680_vm10, %v694_v8, 0.0  ;;  %v2277_v21 = vsel %vm680_vm10, %v697_v47, 0.0  ;;  %v2280_v59 = vsel %vm680_vm10, %v700_v7, 0.0  ;;  %v2283_v63 = vsel %vm680_vm10, %v703_v13, 0.0 }
  0x48   : > { %2840 = vst [vmem:[#allocation41_spill] sm:$0xff] %v2262_v44  ;;  %2841 = vst [vmem:[#allocation42_spill] sm:$0xff] %v2265_v56  ;;  %v733_v0 = vmul.f32 %v1973_v43, %v683_v23  ;;  %v734_v49 = vmul.f32 %v1973_v43, %v721_v15  ;;  %v735_v5 = vmul.f32 %v1973_v43, %v2243_v24 }
  0x49   : > { %2842 = vst [vmem:[#allocation43_spill] sm:$0xff] %v2268_v18  ;;  %2843 = vst [vmem:[#allocation44_spill] sm:$0xff] %v2271_v19  ;;  %v736_v48 = vmul.f32 %v1973_v43, %v2259_v39  ;;  %v737_v31 = vmul.f32 %v1973_v43, %v2246_v25  ;;  %v738_v30 = vmul.f32 %v1973_v43, %v2268_v18 }
  0x4a   : > { %2844 = vst [vmem:[#allocation45_spill] sm:$0xff] %v2274_v20  ;;  %2845 = vst [vmem:[#allocation46_spill] sm:$0xff] %v2277_v21  ;;  %v739_v12 = vmul.f32 %v1973_v43, %v2249_v37  ;;  %v740_v8 = vmul.f32 %v1973_v43, %v2271_v19  ;;  %v741_v46 = vmul.f32 %v1973_v43, %v2252_v28  ;;  %v768_v37 = vrot.slane %v2096_v29, 7 }
  0x4b   : > { %2846 = vst [vmem:[#allocation47_spill] sm:$0xff] %v2280_v59  ;;  %2847 = vst [vmem:[#allocation48_spill] sm:$0xff] %v2283_v63  ;;  %v742_v47 = vmul.f32 %v1973_v43, %v2274_v20  ;;  %v743_v6 = vmul.f32 %v1973_v43, %v2255_v4  ;;  %v744_v7 = vmul.f32 %v1973_v43, %v2277_v21 }
  0x4c   : > { %v745_v9 = vmul.f32 %v1973_v43, %v2262_v44  ;;  %v746_v13 = vmul.f32 %v1973_v43, %v2280_v59  ;;  %v747_v23 = vmul.f32 %v1973_v43, %v2265_v56  ;;  %v748_v15 = vmul.f32 %v1973_v43, %v2283_v63 }
  0x4d   : > { %v749_v20 = vadd.f32 %v733_v0, %v2201_v55  ;;  %v750_v28 = vadd.f32 %v734_v49, %v2203_v36  ;;  %v751_v4 = vadd.f32 %v735_v5, %v2205_v52  ;;  %v752_v21 = vadd.f32 %v736_v48, %v2207_v35  ;;  %v2848_v48 = vld [vmem:[#allocation19_spill] sm:$0xff] }
  0x4e   : > { %v753_v19 = vadd.f32 %v737_v31, %v2209_v51  ;;  %v754_v44 = vadd.f32 %v738_v30, %v2211_v32  ;;  %v767_v59 = vrot.slane %v2085_v11, 7  ;;  %v755_v56 = vadd.f32 %v739_v12, %v2213_v50  ;;  %v2854_v31 = vld [vmem:[#allocation31_spill] sm:$0xff] }
  0x4f   : > { %v756_v43 = vadd.f32 %v740_v8, %v2215_v27  ;;  %v757_v55 = vadd.f32 %v741_v46, %v2217_v45  ;;  %v758_v36 = vadd.f32 %v742_v47, %v2219_v26  ;;  %v759_v52 = vadd.f32 %v743_v6, %v2221_v42  ;;  %v2850_v26 = vld [vmem:[#allocation29_spill] sm:$0xff]  ;;  %v2857_v46 = vld [vmem:[#allocation26_spill] sm:$0xff] }
  0x50   : > { %v760_v35 = vadd.f32 %v744_v7, %v2223_v60  ;;  %v761_v0 = vadd.f32 %v745_v9, %v676_v16  ;;  %v762_v51 = vadd.f32 %v746_v13, %v677_v17  ;;  %v763_v49 = vadd.f32 %v747_v23, %v678_v10  ;;  %v2851_v60 = vld [vmem:[#allocation20_spill] sm:$0xff]  ;;  %v2852_v17 = vld [vmem:[#allocation30_spill] sm:$0xff]  ;;  %v2858_v6 = vld [vmem:[#allocation33_spill] sm:$0xff] }
  0x51   : > { %v764_v32 = vadd.f32 %v748_v15, %v679_v22  ;;  %v777_v5 = vmul.f32 %v2066_v14, %v2113_v38  ;;  %v778_v50 = vmul.f32 %v2066_v14, %v2848_v48  ;;  %v2334_v27 = vsel %vm559_vm9, %v767_v59, %v768_v37  ;;  %v2853_v22 = vld [vmem:[#allocation24_spill] sm:$0xff]  ;;  %v2855_v37 = vld [vmem:[#allocation25_spill] sm:$0xff]  ;;  %v2859_v9 = vld [vmem:[#allocation27_spill] sm:$0xff] }
  0x52   : > { %v2337_v45 = vsel %vm559_vm9, 0.0, %v767_v59  ;;  %v779_v42 = vmul.f32 %v2066_v14, %v2850_v26  ;;  %v780_v16 = vmul.f32 %v2066_v14, %v2851_v60  ;;  %v781_v10 = vmul.f32 %v2066_v14, %v2852_v17  ;;  %v2856_v59 = vld [vmem:[#allocation32_spill] sm:$0xff]  ;;  %v2860_v23 = vld [vmem:[#allocation34_spill] sm:$0xff] }
  0x53   : > { %2849 = vst [vmem:[#allocation19_spill] sm:$0xff] %v2337_v45  ;;  %v782_v38 = vmul.f32 %v2066_v14, %v2853_v22  ;;  %v783_v30 = vmul.f32 %v2066_v14, %v2854_v31  ;;  %v784_v12 = vmul.f32 %v2066_v14, %v2855_v37  ;;  %v785_v8 = vmul.f32 %v2066_v14, %v2856_v59  ;;  %v2861_v48 = vld [vmem:[#allocation28_spill] sm:$0xff] }
  0x54   : > { %v786_v47 = vmul.f32 %v2066_v14, %v2857_v46  ;;  %v787_v7 = vmul.f32 %v2066_v14, %v2858_v6  ;;  %v788_v13 = vmul.f32 %v2066_v14, %v2859_v9  ;;  %v789_v15 = vmul.f32 %v2066_v14, %v2860_v23 }
  0x55   : > { %v790_v31 = vmul.f32 %v2066_v14, %v2861_v48  ;;  %v791_v37 = vmul.f32 %v2066_v14, %v2337_v45  ;;  %v792_v59 = vmul.f32 %v2066_v14, %v2334_v27  ;;  %v793_v22 = vadd.f32 %v777_v5, %v749_v20  ;;  %v2862_v45 = vld [vmem:[#allocation17_spill] sm:$0xff] }
  0x56   : > { %v794_v46 = vadd.f32 %v778_v50, %v750_v28  ;;  %v795_v17 = vadd.f32 %v779_v42, %v751_v4  ;;  %v796_v60 = vadd.f32 %v780_v16, %v752_v21  ;;  %v797_v6 = vadd.f32 %v781_v10, %v753_v19 }
  0x57   : > { %v798_v26 = vadd.f32 %v782_v38, %v754_v44  ;;  %v799_v63 = vadd.f32 %v783_v30, %v755_v56  ;;  %v800_v9 = vadd.f32 %v784_v12, %v756_v43  ;;  %v801_v18 = vadd.f32 %v785_v8, %v757_v55  ;;  %v2863_v55 = vld [vmem:[#allocation15_spill] sm:$0xff]  ;;  %v2867_v8 = vld [vmem:[#allocation5_spill] sm:$0xff] }
  0x58   : > { %v802_v25 = vadd.f32 %v786_v47, %v758_v36  ;;  %v803_v23 = vadd.f32 %v787_v7, %v759_v52  ;;  %v804_v39 = vadd.f32 %v788_v13, %v760_v35  ;;  %v805_v24 = vadd.f32 %v789_v15, %v761_v0  ;;  %v2864_v52 = vld [vmem:[#allocation16_spill] sm:$0xff]  ;;  %v2865_v0 = vld [vmem:[#allocation18_spill] sm:$0xff] }
  0x59   : > { %v806_v48 = vadd.f32 %v790_v31, %v762_v51  ;;  %v807_v29 = vadd.f32 %v791_v37, %v763_v49  ;;  %v808_v11 = vadd.f32 %v792_v59, %v764_v32  ;;  %v813_v3 = vmul.f32 %v2862_v45, %v1943_v33  ;;  %v2866_v49 = vld [vmem:[#allocation21_spill] sm:$0xff]  ;;  %v2869_v7 = vld [vmem:[#allocation6_spill] sm:$0xff] }
  0x5a   : > { %v814_v14 = vmul.f32 %v2862_v45, %v1947_v34  ;;  %v815_v4 = vmul.f32 %v2862_v45, %v1963_v40  ;;  %v816_v28 = vmul.f32 %v2862_v45, %v1967_v41  ;;  %v817_v44 = vmul.f32 %v2862_v45, %v2006_v53 }
  0x5b   : > { %v818_v56 = vmul.f32 %v2862_v45, %v2010_v54  ;;  %v819_v19 = vmul.f32 %v2862_v45, %v2016_v57  ;;  %v820_v33 = vmul.f32 %v2862_v45, %v2020_v58  ;;  %v821_v34 = vmul.f32 %v2862_v45, %v2029_v61 }
  0x5c   : > { %v822_v20 = vmul.f32 %v2862_v45, %v2033_v62  ;;  %v823_v21 = vmul.f32 %v2862_v45, %v2039_v1  ;;  %v824_v43 = vmul.f32 %v2862_v45, %v2043_v2  ;;  %v825_v36 = vmul.f32 %v2862_v45, %v2863_v55 }
  0x5d   : > { %v826_v35 = vmul.f32 %v2862_v45, %v2864_v52  ;;  %v827_v51 = vmul.f32 %v2862_v45, %v2865_v0  ;;  %v828_v32 = vmul.f32 %v2862_v45, %v2866_v49  ;;  %v829_v5 = vadd.f32 %v813_v3, %v793_v22 }
  0x5e   : > { %v830_v50 = vadd.f32 %v814_v14, %v794_v46  ;;  %v831_v42 = vadd.f32 %v815_v4, %v795_v17  ;;  %v832_v16 = vadd.f32 %v816_v28, %v796_v60  ;;  %v833_v10 = vadd.f32 %v817_v44, %v797_v6  ;;  %v2870_v46 = vld [vmem:[#allocation22_spill] sm:$0xff]  ;;  %v2876_v4 = vld [vmem:[#allocation36_spill] sm:$0xff]  ;;  %v2877_v44 = vld [vmem:[#allocation43_spill] sm:$0xff] }
  0x5f   : > { %v834_v38 = vadd.f32 %v818_v56, %v798_v26  ;;  %v845_v31 = vrot.slane %v2865_v0, 1  ;;  %v846_v30 = vrot.slane %v2866_v49, 1  ;;  %v835_v37 = vadd.f32 %v819_v19, %v799_v63  ;;  %v2878_v19 = vld [vmem:[#allocation37_spill] sm:$0xff] }
  0x60   : > { %v836_v12 = vadd.f32 %v820_v33, %v800_v9  ;;  %v837_v59 = vadd.f32 %v821_v34, %v801_v18  ;;  %v2868_v47 = vsub.s32 5, %v2867_v8  ;;  %v838_v15 = vadd.f32 %v822_v20, %v802_v25  ;;  %v2872_v18 = vld [vmem:[#allocation23_spill] sm:$0xff]  ;;  %v2879_v34 = vld [vmem:[#allocation44_spill] sm:$0xff] }
  0x61   : > { %v839_v52 = vadd.f32 %v823_v21, %v803_v23  ;;  %v840_v45 = vadd.f32 %v824_v43, %v804_v39  ;;  %v841_v3 = vadd.f32 %v825_v36, %v805_v24  ;;  %v842_v22 = vadd.f32 %v826_v35, %v806_v48  ;;  %v2874_v23 = vld [vmem:[#allocation35_spill] sm:$0xff]  ;;  %v2875_v24 = vld [vmem:[#allocation40_spill] sm:$0xff]  ;;  %v2880_v21 = vld [vmem:[#allocation38_spill] sm:$0xff] }
  0x62   : > { %v854_v13 = vrot.slane %v2869_v7, %v2868_v47  ;;  %v843_v17 = vadd.f32 %v827_v51, %v807_v29  ;;  %v844_v60 = vadd.f32 %v828_v32, %v808_v11  ;;  %v889_v26 = vrot.slane %v2870_v46, 7  ;;  %v2881_v36 = vld [vmem:[#allocation45_spill] sm:$0xff]  ;;  %v2882_v51 = vld [vmem:[#allocation39_spill] sm:$0xff]  ;;  %v2887_v46 = vld [vmem:[#allocation48_spill] sm:$0xff] }
  0x63   : > { %v2406_v6 = vsel %vm680_vm10, %v845_v31, %v846_v30  ;;  %v2409_v63 = vsel %vm680_vm10, %v846_v30, 0.0  ;;  %v890_v9 = vrot.slane %v2872_v18, 7  ;;  %v2873_v14 = vsub.s32 6, %v2867_v8  ;;  %v2883_v31 = vld [vmem:[#allocation46_spill] sm:$0xff]  ;;  %v2884_v47 = vld [vmem:[#allocation41_spill] sm:$0xff] }
  0x64   : > { %2871 = vst [vmem:[#allocation17_spill] sm:$0xff] %v2406_v6  ;;  %v855_v39 = vmul.f32 %v854_v13, %v2874_v23  ;;  %v856_v48 = vmul.f32 %v854_v13, %v2875_v24  ;;  %v933_v11 = vsub.s32 7, %v2867_v8  ;;  %v857_v28 = vmul.f32 %v854_v13, %v2876_v4  ;;  %v2886_v24 = vld [vmem:[#allocation42_spill] sm:$0xff] }
  0x65   : > { %v898_v25 = vrot.slane %v2869_v7, %v2873_v14  ;;  %v858_v56 = vmul.f32 %v854_v13, %v2877_v44  ;;  %v859_v33 = vmul.f32 %v854_v13, %v2878_v19  ;;  %v860_v20 = vmul.f32 %v854_v13, %v2879_v34  ;;  %v2885_v14 = vld [vmem:[#allocation47_spill] sm:$0xff] }
  0x66   : > { %v861_v43 = vmul.f32 %v854_v13, %v2880_v21  ;;  %v862_v35 = vmul.f32 %v854_v13, %v2881_v36  ;;  %v863_v32 = vmul.f32 %v854_v13, %v2882_v51  ;;  %v864_v30 = vmul.f32 %v854_v13, %v2883_v31 }
  0x67   : > { %v865_v8 = vmul.f32 %v854_v13, %v2884_v47  ;;  %v866_v23 = vmul.f32 %v854_v13, %v2885_v14  ;;  %v867_v29 = vmul.f32 %v854_v13, %v2886_v24  ;;  %v868_v49 = vmul.f32 %v854_v13, %v2887_v46 }
  0x68   : > { %v869_v0 = vmul.f32 %v854_v13, %v2406_v6  ;;  %v870_v55 = vmul.f32 %v854_v13, %v2409_v63  ;;  %v871_v2 = vadd.f32 %v855_v39, %v829_v5  ;;  %v872_v21 = vadd.f32 %v856_v48, %v830_v50  ;;  %v2888_v5 = vld [vmem:[#allocation29_spill] sm:$0xff]  ;;  %v2899_v48 = vld [vmem:[#allocation28_spill] sm:$0xff] }
  0x69   : > { %v873_v1 = vadd.f32 %v857_v28, %v831_v42  ;;  %v874_v36 = vadd.f32 %v858_v56, %v832_v16  ;;  %v875_v62 = vadd.f32 %v859_v33, %v833_v10  ;;  %v876_v51 = vadd.f32 %v860_v20, %v834_v38  ;;  %v2889_v42 = vld [vmem:[#allocation20_spill] sm:$0xff]  ;;  %v2890_v10 = vld [vmem:[#allocation30_spill] sm:$0xff]  ;;  %v2900_v28 = vld [vmem:[#allocation19_spill] sm:$0xff] }
  0x6a   : > { %v877_v61 = vadd.f32 %v861_v43, %v835_v37  ;;  %v878_v31 = vadd.f32 %v862_v35, %v836_v12  ;;  %v879_v58 = vadd.f32 %v863_v32, %v837_v59  ;;  %v880_v47 = vadd.f32 %v864_v30, %v838_v15  ;;  %v2891_v37 = vld [vmem:[#allocation24_spill] sm:$0xff]  ;;  %v2892_v59 = vld [vmem:[#allocation31_spill] sm:$0xff] }
  0x6b   : > { %v881_v57 = vadd.f32 %v865_v8, %v839_v52  ;;  %v882_v14 = vadd.f32 %v866_v23, %v840_v45  ;;  %v883_v54 = vadd.f32 %v867_v29, %v841_v3  ;;  %v884_v24 = vadd.f32 %v868_v49, %v842_v22  ;;  %v2893_v52 = vld [vmem:[#allocation25_spill] sm:$0xff]  ;;  %v2894_v3 = vld [vmem:[#allocation32_spill] sm:$0xff] }
  0x6c   : > { %v885_v53 = vadd.f32 %v869_v0, %v843_v17  ;;  %v886_v46 = vadd.f32 %v870_v55, %v844_v60  ;;  %v891_v6 = vsel %vm559_vm9, %v889_v26, %v890_v9  ;;  %v894_v13 = vsel %vm559_vm9, 0.0, %v889_v26  ;;  %v2895_v0 = vld [vmem:[#allocation26_spill] sm:$0xff]  ;;  %v2896_v22 = vld [vmem:[#allocation33_spill] sm:$0xff]  ;;  %v2897_v60 = vld [vmem:[#allocation27_spill] sm:$0xff] }
  0x6d   : > { %v899_v50 = vmul.f32 %v898_v25, %v2888_v5  ;;  %v900_v16 = vmul.f32 %v898_v25, %v2889_v42  ;;  %v901_v38 = vmul.f32 %v898_v25, %v2890_v10  ;;  %v902_v12 = vmul.f32 %v898_v25, %v2891_v37  ;;  %v2898_v9 = vld [vmem:[#allocation34_spill] sm:$0xff]  ;;  %v2452_v23 = vld [vmem:[%s2695_s3 + $0x8] ss:$0 sm:$0xff] }
  0x6e   : > { %v903_v15 = vmul.f32 %v898_v25, %v2892_v59  ;;  %v904_v45 = vmul.f32 %v898_v25, %v2893_v52  ;;  %v905_v49 = vmul.f32 %v898_v25, %v2894_v3  ;;  %v906_v55 = vmul.f32 %v898_v25, %v2895_v0  ;;  %v2912_v0 = vld [vmem:[#allocation21_spill] sm:$0xff] }
  0x6f   : > { %v907_v17 = vmul.f32 %v898_v25, %v2896_v22  ;;  %v908_v26 = vmul.f32 %v898_v25, %v2897_v60  ;;  %v909_v39 = vmul.f32 %v898_v25, %v2898_v9  ;;  %v910_v29 = vmul.f32 %v898_v25, %v2899_v48  ;;  %v2913_v22 = vld [vmem:[#allocation22_spill] sm:$0xff] }
  0x70   : > { %v911_v56 = vmul.f32 %v898_v25, %v2900_v28  ;;  %v912_v33 = vmul.f32 %v898_v25, %v2334_v27  ;;  %v913_v20 = vmul.f32 %v898_v25, %v894_v13  ;;  %v914_v43 = vmul.f32 %v898_v25, %v891_v6 }
  0x71   : > { %v915_v35 = vadd.f32 %v899_v50, %v871_v2  ;;  %v916_v32 = vadd.f32 %v900_v16, %v872_v21  ;;  %v917_v30 = vadd.f32 %v901_v38, %v873_v1  ;;  %v918_v8 = vadd.f32 %v902_v12, %v874_v36  ;;  %v2907_v50 = vld [vmem:[#allocation13_spill] sm:$0xff]  ;;  %v2908_v16 = vld [vmem:[#allocation14_spill] sm:$0xff] }
  0x72   : > { %v919_v5 = vadd.f32 %v903_v15, %v875_v62  ;;  %v920_v42 = vadd.f32 %v904_v45, %v876_v51  ;;  %v921_v10 = vadd.f32 %v905_v49, %v877_v61  ;;  %v934_v37 = vrot.slane %v2869_v7, %v933_v11  ;;  %v2903_v51 = vld [vmem:[#allocation9_spill] sm:$0xff]  ;;  %v2910_v15 = vld [vmem:[#allocation16_spill] sm:$0xff]  ;;  %v2911_v45 = vld [vmem:[#allocation18_spill] sm:$0xff] }
  0x73   : > { %v922_v59 = vadd.f32 %v906_v55, %v878_v31  ;;  %v923_v52 = vadd.f32 %v907_v17, %v879_v58  ;;  %v924_v3 = vadd.f32 %v908_v26, %v880_v47  ;;  %v925_v27 = vadd.f32 %v909_v39, %v881_v57 }
  0x74   : > { %v926_v13 = vadd.f32 %v910_v29, %v882_v14  ;;  %v927_v6 = vadd.f32 %v911_v56, %v883_v54  ;;  %v928_v2 = vadd.f32 %v912_v33, %v884_v24  ;;  %v929_v25 = vadd.f32 %v913_v20, %v885_v53  ;;  %v2901_v53 = vld [vmem:[#allocation7_spill] sm:$0xff]  ;;  %v2906_v24 = vld [vmem:[#allocation12_spill] sm:$0xff] }
  0x75   : > { %v930_v1 = vadd.f32 %v914_v43, %v886_v46  ;;  %v968_v21 = vrot.slane %v2872_v18, 1  ;;  %v977_v36 = vmul.f32 %v2452_v23, %v2876_v4  ;;  %v978_v62 = vmul.f32 %v2452_v23, %v2877_v44  ;;  %v2902_v46 = vld [vmem:[#allocation8_spill] sm:$0xff]  ;;  %v2904_v4 = vld [vmem:[#allocation10_spill] sm:$0xff]  ;;  %v2905_v14 = vld [vmem:[#allocation11_spill] sm:$0xff] }
  0x76   : > { %v935_v61 = vmul.f32 %v934_v37, %v1963_v40  ;;  %v936_v7 = vmul.f32 %v934_v37, %v1967_v41  ;;  %v979_v57 = vmul.f32 %v2452_v23, %v2878_v19  ;;  %v980_v54 = vmul.f32 %v2452_v23, %v2879_v34  ;;  %v2909_v19 = vld [vmem:[#allocation15_spill] sm:$0xff]  ;;  %v2914_v43 = vld [vmem:[#allocation38_spill] sm:$0xff] }
  0x77   : > { %v937_v58 = vmul.f32 %v934_v37, %v2901_v53  ;;  %v938_v11 = vmul.f32 %v934_v37, %v2902_v46  ;;  %v939_v31 = vmul.f32 %v934_v37, %v2903_v51  ;;  %v940_v47 = vmul.f32 %v934_v37, %v2904_v4 }
  0x78   : > { %v941_v44 = vmul.f32 %v934_v37, %v2905_v14  ;;  %v942_v40 = vmul.f32 %v934_v37, %v2906_v24  ;;  %v943_v41 = vmul.f32 %v934_v37, %v2907_v50  ;;  %v944_v38 = vmul.f32 %v934_v37, %v2908_v16  ;;  %v2915_v14 = vld [vmem:[#allocation45_spill] sm:$0xff] }
  0x79   : > { %v945_v12 = vmul.f32 %v934_v37, %v2909_v19  ;;  %v946_v34 = vmul.f32 %v934_v37, %v2910_v15  ;;  %v947_v49 = vmul.f32 %v934_v37, %v2911_v45  ;;  %v948_v55 = vmul.f32 %v934_v37, %v2912_v0  ;;  %v2923_v16 = vld [vmem:[#allocation17_spill] sm:$0xff] }
  0x7a   : > { %v949_v17 = vmul.f32 %v934_v37, %v2913_v22  ;;  %v950_v60 = vmul.f32 %v934_v37, %v2872_v18  ;;  %v951_v26 = vadd.f32 %v935_v61, %v915_v35  ;;  %v952_v9 = vadd.f32 %v936_v7, %v916_v32  ;;  %v2916_v18 = vld [vmem:[#allocation39_spill] sm:$0xff] }
  0x7b   : > { %v953_v39 = vadd.f32 %v937_v58, %v917_v30  ;;  %v954_v48 = vadd.f32 %v938_v11, %v918_v8  ;;  %v955_v29 = vadd.f32 %v939_v31, %v919_v5  ;;  %v956_v28 = vadd.f32 %v940_v47, %v920_v42  ;;  %v2917_v5 = vld [vmem:[#allocation46_spill] sm:$0xff]  ;;  %v2922_v31 = vld [vmem:[#allocation48_spill] sm:$0xff] }
  0x7c   : > { %v957_v56 = vadd.f32 %v941_v44, %v921_v10  ;;  %v958_v33 = vadd.f32 %v942_v40, %v922_v59  ;;  %v959_v20 = vadd.f32 %v943_v41, %v923_v52  ;;  %v981_v53 = vmul.f32 %v2452_v23, %v2914_v43  ;;  %v1454_v59 = vld [vmem:[%s2696_s4] ss:$0 sm:$0xff] }
  0x7d   : > { %v960_v46 = vadd.f32 %v944_v38, %v924_v3  ;;  %v961_v51 = vadd.f32 %v945_v12, %v925_v27  ;;  %v962_v4 = vadd.f32 %v946_v34, %v926_v13  ;;  %v982_v24 = vmul.f32 %v2452_v23, %v2915_v14  ;;  %v2918_v27 = vld [vmem:[#allocation41_spill] sm:$0xff] }
  0x7e   : > { %v963_v50 = vadd.f32 %v947_v49, %v927_v6  ;;  %v983_v35 = vmul.f32 %v2452_v23, %v2916_v18  ;;  %v993_v32 = vadd.f32 %v977_v36, %v951_v26  ;;  %v994_v30 = vadd.f32 %v978_v62, %v952_v9  ;;  %v2920_v62 = vld [vmem:[#allocation47_spill] sm:$0xff] }
  0x7f   : > { %v964_v8 = vadd.f32 %v948_v55, %v928_v2  ;;  %v984_v42 = vmul.f32 %v2452_v23, %v2917_v5  ;;  %v995_v10 = vadd.f32 %v979_v57, %v953_v39  ;;  %v996_v37 = vadd.f32 %v980_v54, %v954_v48  ;;  %v2921_v54 = vld [vmem:[#allocation42_spill] sm:$0xff] }
  0x80   : > { %v965_v52 = vadd.f32 %v949_v17, %v929_v25  ;;  %v966_v3 = vadd.f32 %v950_v60, %v930_v1  ;;  %v985_v13 = vmul.f32 %v2452_v23, %v2918_v27  ;;  %v997_v6 = vadd.f32 %v981_v53, %v955_v29 }
  0x81   : > { %v2919_v61 = vrot.slane %v2913_v22, 1  ;;  %v972_v2 = vsel %vm680_vm10, %v968_v21, 0.0  ;;  %v986_v7 = vmul.f32 %v2452_v23, %v2920_v62  ;;  %v998_v57 = vadd.f32 %v982_v24, %v956_v28 }
  0x82   : > { %v987_v58 = vmul.f32 %v2452_v23, %v2921_v54  ;;  %v999_v11 = vadd.f32 %v983_v35, %v957_v56  ;;  %v1016_v25 = vmul.f32 %v1454_v59, %v993_v32  ;;  %v1017_v1 = vmul.f32 %v1454_v59, %v994_v30 }
  0x83   : > { %v969_v36 = vsel %vm680_vm10, %v2919_v61, %v968_v21  ;;  %v988_v47 = vmul.f32 %v2452_v23, %v2922_v31  ;;  %v1000_v44 = vadd.f32 %v984_v42, %v958_v33  ;;  %v1018_v40 = vmul.f32 %v1454_v59, %v995_v10  ;;  %v1455_v21 = vld [vmem:[%s2697_s5] ss:$0 sm:$0xff] }
  0x84   : > { %v1019_v41 = vmul.f32 %v1454_v59, %v996_v37  ;;  %v989_v38 = vmul.f32 %v2452_v23, %v2923_v16  ;;  %v990_v19 = vmul.f32 %v2452_v23, %v2409_v63  ;;  %v1001_v12 = vadd.f32 %v985_v13, %v959_v20 }
  0x85   : > { %v1020_v15 = vmul.f32 %v1454_v59, %v997_v6  ;;  %v991_v34 = vmul.f32 %v2452_v23, %v969_v36  ;;  %v992_v45 = vmul.f32 %v2452_v23, %v972_v2  ;;  %v1002_v49 = vadd.f32 %v986_v7, %v960_v46 }
  0x86   : > { %v1021_v0 = vmul.f32 %v1454_v59, %v998_v57  ;;  %v1003_v55 = vadd.f32 %v987_v58, %v961_v51  ;;  %v1022_v22 = vmul.f32 %v1454_v59, %v999_v11  ;;  %v2512_v17 = vadd.f32 %v1455_v21, %v1016_v25 }
  0x87   : > { %v2514_v60 = vadd.f32 %v1455_v21, %v1017_v1  ;;  %v1004_v26 = vadd.f32 %v988_v47, %v962_v4  ;;  %v1023_v9 = vmul.f32 %v1454_v59, %v1000_v44  ;;  %v2516_v39 = vadd.f32 %v1455_v21, %v1018_v40 }
  0x88   : > { %v2518_v48 = vadd.f32 %v1455_v21, %v1019_v41  ;;  %v1005_v63 = vadd.f32 %v989_v38, %v963_v50  ;;  %v1006_v29 = vadd.f32 %v990_v19, %v964_v8  ;;  %v1024_v28 = vmul.f32 %v1454_v59, %v1001_v12 }
  0x89   : > { %v2520_v56 = vadd.f32 %v1455_v21, %v1020_v15  ;;  %v1007_v23 = vadd.f32 %v991_v34, %v965_v52  ;;  %v1008_v33 = vadd.f32 %v992_v45, %v966_v3  ;;  %v1025_v20 = vmul.f32 %v1454_v59, %v1002_v49 }
  0x8a   : > { %v2522_v43 = vadd.f32 %v1455_v21, %v1021_v0  ;;  %v1026_v53 = vmul.f32 %v1454_v59, %v1003_v55  ;;  %v2524_v46 = vadd.f32 %v1455_v21, %v1022_v22  ;;  %v1456_v51 = vmul.f32 -1.442695, %v2512_v17 }
  0x8b   : > { %v1457_v4 = vmul.f32 -1.442695, %v2514_v60  ;;  %v1027_v14 = vmul.f32 %v1454_v59, %v1004_v26  ;;  %v2528_v24 = vadd.f32 %v1455_v21, %v1023_v9  ;;  %v1458_v50 = vmul.f32 -1.442695, %v2516_v39 }
  0x8c   : > { %v1459_v18 = vmul.f32 -1.442695, %v2518_v48  ;;  %v1028_v35 = vmul.f32 %v1454_v59, %v1005_v63  ;;  %v2532_v32 = vadd.f32 %v1455_v21, %v1024_v28  ;;  %1555 = vpow2.f32 %v1456_v51 }
  0x8d   : > { %v1460_v30 = vmul.f32 -1.442695, %v2520_v56  ;;  %v1029_v8 = vmul.f32 %v1454_v59, %v1006_v29  ;;  %v2535_v5 = vadd.f32 %v1455_v21, %v1025_v20  ;;  %1557 = vpow2.f32 %v1457_v4 }
  0x8e   : > { %v1461_v42 = vmul.f32 -1.442695, %v2522_v43  ;;  %v1030_v10 = vmul.f32 %v1454_v59, %v1007_v23  ;;  %v2538_v37 = vadd.f32 %v1455_v21, %v1026_v53  ;;  %1559 = vpow2.f32 %v1458_v50 }
  0x8f   : > { %v1462_v52 = vmul.f32 -1.442695, %v2524_v46  ;;  %v1031_v3 = vmul.f32 %v1454_v59, %v1008_v33  ;;  %v2541_v27 = vadd.f32 %v1455_v21, %v1027_v14  ;;  %1561 = vpow2.f32 %v1459_v18 }
  0x90   : > { %v1463_v13 = vmul.f32 -1.442695, %v2528_v24  ;;  %v2544_v6 = vadd.f32 %v1455_v21, %v1028_v35  ;;  %1563 = vpow2.f32 %v1460_v30  ;;  %v1464_v61 = vmul.f32 -1.442695, %v2532_v32 }
  0x91   : > { %v2547_v36 = vadd.f32 %v1455_v21, %v1029_v8  ;;  %1565 = vpow2.f32 %v1461_v42  ;;  %v1465_v2 = vmul.f32 -1.442695, %v2535_v5  ;;  %v2550_v62 = vadd.f32 %v1455_v21, %v1030_v10 }
  0x92   : > { %1567 = vpow2.f32 %v1462_v52  ;;  %v1466_v59 = vmul.f32 -1.442695, %v2538_v37  ;;  %v2553_v7 = vadd.f32 %v1455_v21, %v1031_v3  ;;  %v1467_v57 = vmul.f32 -1.442695, %v2541_v27 }
  0x93   : > { %1569 = vpow2.f32 %v1463_v13  ;;  %v1468_v54 = vmul.f32 -1.442695, %v2544_v6  ;;  %v1469_v58 = vmul.f32 -1.442695, %v2547_v36  ;;  %v1470_v25 = vmul.f32 -1.442695, %v2550_v62 }
  0x94   : > { %1571 = vpow2.f32 %v1464_v61  ;;  %v1471_v31 = vmul.f32 -1.442695, %v2553_v7 }
  0x95   : > { %1573 = vpow2.f32 %v1465_v2 }
  0x96   : > { %v1556_v11 = vpop.eup %1555  ;;  %1575 = vpow2.f32 %v1466_v59 }
  0x97   : > { %v1558_v1 = vpop.eup %1557  ;;  %1577 = vpow2.f32 %v1467_v57  ;;  %v1103_v44 = vadd.f32 1.0, %v1556_v11 }
  0x98   : > { %v1560_v47 = vpop.eup %1559  ;;  %1579 = vpow2.f32 %v1468_v54  ;;  %v1104_v41 = vadd.f32 1.0, %v1558_v1 }
  0x99   : > { %v1562_v40 = vpop.eup %1561  ;;  %1581 = vpow2.f32 %v1469_v58  ;;  %v1105_v16 = vadd.f32 1.0, %v1560_v47 }
  0x9a   : > { %v1564_v21 = vpop.eup %1563  ;;  %1583 = vpow2.f32 %v1470_v25  ;;  %v1106_v19 = vadd.f32 1.0, %v1562_v40 }
  0x9b   : > { %v1566_v38 = vpop.eup %1565  ;;  %1585 = vpow2.f32 %v1471_v31  ;;  %v1107_v15 = vadd.f32 1.0, %v1564_v21 }
  0x9c   : > { %v1568_v12 = vpop.eup %1567  ;;  %1587 = vrcp.f32 %v1103_v44  ;;  %v1108_v45 = vadd.f32 1.0, %v1566_v38 }
  0x9d   : > { %v1570_v34 = vpop.eup %1569  ;;  %1589 = vrcp.f32 %v1104_v41  ;;  %v1109_v0 = vadd.f32 1.0, %v1568_v12 }
  0x9e   : > { %v1572_v49 = vpop.eup %1571  ;;  %1591 = vrcp.f32 %v1105_v16  ;;  %v1110_v22 = vadd.f32 1.0, %v1570_v34 }
  0x9f   : > { %v1574_v55 = vpop.eup %1573  ;;  %1593 = vrcp.f32 %v1106_v19  ;;  %v1111_v9 = vadd.f32 1.0, %v1572_v49 }
  0xa0   : > { %v1576_v26 = vpop.eup %1575  ;;  %1595 = vrcp.f32 %v1107_v15  ;;  %v1112_v29 = vadd.f32 1.0, %v1574_v55 }
  0xa1   : > { %v1578_v63 = vpop.eup %1577  ;;  %1597 = vrcp.f32 %v1108_v45  ;;  %v1113_v23 = vadd.f32 1.0, %v1576_v26 }
  0xa2   : > { %v1580_v28 = vpop.eup %1579  ;;  %1599 = vrcp.f32 %v1109_v0  ;;  %v1114_v20 = vadd.f32 1.0, %v1578_v63 }
  0xa3   : > { %v1582_v33 = vpop.eup %1581  ;;  %1601 = vrcp.f32 %v1110_v22  ;;  %v1115_v51 = vadd.f32 1.0, %v1580_v28 }
  0xa4   : > { %v1584_v53 = vpop.eup %1583  ;;  %1603 = vrcp.f32 %v1111_v9  ;;  %v1116_v14 = vadd.f32 1.0, %v1582_v33 }
  0xa5   : > { %v1586_v4 = vpop.eup %1585  ;;  %1605 = vrcp.f32 %v1112_v29  ;;  %v1117_v18 = vadd.f32 1.0, %v1584_v53 }
  0xa6   : > { %v1588_v50 = vpop.eup %1587  ;;  %1607 = vrcp.f32 %v1113_v23  ;;  %v1118_v30 = vadd.f32 1.0, %v1586_v4 }
  0xa7   : > { %v1590_v35 = vpop.eup %1589  ;;  %1609 = vrcp.f32 %v1114_v20  ;;  %v1151_v8 = vmul.f32 %v1588_v50, %v2512_v17 }
  0xa8   : > { %v1592_v42 = vpop.eup %1591  ;;  %1611 = vrcp.f32 %v1115_v51  ;;  %v1152_v10 = vmul.f32 %v1590_v35, %v2514_v60 }
  0xa9   : > { %v1594_v52 = vpop.eup %1593  ;;  %1613 = vrcp.f32 %v1116_v14  ;;  %v1153_v3 = vmul.f32 %v1592_v42, %v2516_v39  ;;  %v1184_v13 = vsel %vm1167_vm0, %v1151_v8, 0.0  ;;  %1168 = vst.msk [vmem:[%s2565_s10] sm:$0xff] %vm1167_vm0, %v1151_v8 }
  0xaa   : > { %v1596_v61 = vpop.eup %1595  ;;  %1615 = vrcp.f32 %v1117_v18  ;;  %v1154_v2 = vmul.f32 %v1594_v52, %v2518_v48  ;;  %v1199_v17 = vsel %vm1167_vm0, %v1152_v10, 0.0  ;;  %1169 = vst.msk [vmem:[%s2565_s10 + $0x8] sm:$0xff] %vm1167_vm0, %v1152_v10 }
  0xab   : > { %v1598_v59 = vpop.eup %1597  ;;  %1617 = vrcp.f32 %v1118_v30  ;;  %v1155_v60 = vmul.f32 %v1596_v61, %v2520_v56  ;;  %v1185_v39 = vsel %vm1167_vm0, %v1153_v3, 0.0  ;;  %1170 = vst.msk [vmem:[%s2565_s10 + $0x10] sm:$0xff] %vm1167_vm0, %v1153_v3 }
  0xac   : > { %v1600_v57 = vpop.eup %1599  ;;  %v1156_v54 = vmul.f32 %v1598_v59, %v2522_v43  ;;  %v1186_v58 = vadd.f32 %v1185_v39, %v1184_v13  ;;  %v1200_v48 = vsel %vm1167_vm0, %v1154_v2, 0.0  ;;  %1171 = vst.msk [vmem:[%s2565_s10 + $0x18] sm:$0xff] %vm1167_vm0, %v1154_v2 }
  0xad   : > { %v1602_v11 = vpop.eup %1601  ;;  %v1157_v25 = vmul.f32 %v1600_v57, %v2524_v46  ;;  %v1187_v1 = vsel %vm1167_vm0, %v1155_v60, 0.0  ;;  %v1201_v56 = vadd.f32 %v1200_v48, %v1199_v17  ;;  %1172 = vst.msk [vmem:[%s2565_s10 + $0x20] sm:$0xff] %vm1167_vm0, %v1155_v60 }
  0xae   : > { %v1604_v31 = vpop.eup %1603  ;;  %v1158_v47 = vmul.f32 %v1602_v11, %v2528_v24  ;;  %v1188_v44 = vadd.f32 %v1187_v1, %v1186_v58  ;;  %v1202_v43 = vsel %vm1167_vm0, %v1156_v54, 0.0  ;;  %1173 = vst.msk [vmem:[%s2565_s10 + $0x28] sm:$0xff] %vm1167_vm0, %v1156_v54 }
  0xaf   : > { %v1606_v40 = vpop.eup %1605  ;;  %v1159_v41 = vmul.f32 %v1604_v31, %v2532_v32  ;;  %v1189_v46 = vsel %vm1167_vm0, %v1157_v25, 0.0  ;;  %v1203_v21 = vadd.f32 %v1202_v43, %v1201_v56  ;;  %1174 = vst.msk [vmem:[%s2565_s10 + $0x30] sm:$0xff] %vm1167_vm0, %v1157_v25 }
  0xb0   : > { %v1608_v16 = vpop.eup %1607  ;;  %v1160_v38 = vmul.f32 %v1606_v40, %v2535_v5  ;;  %v1190_v19 = vadd.f32 %v1189_v46, %v1188_v44  ;;  %v1204_v24 = vsel %vm1167_vm0, %v1158_v47, 0.0  ;;  %1175 = vst.msk [vmem:[%s2565_s10 + $0x38] sm:$0xff] %vm1167_vm0, %v1158_v47 }
  0xb1   : > { %v1610_v12 = vpop.eup %1609  ;;  %v1161_v15 = vmul.f32 %v1608_v16, %v2538_v37  ;;  %v1191_v32 = vsel %vm1167_vm0, %v1159_v41, 0.0  ;;  %v1205_v34 = vadd.f32 %v1204_v24, %v1203_v21  ;;  %1176 = vst.msk [vmem:[%s2565_s10 + $0x40] sm:$0xff] %vm1167_vm0, %v1159_v41 }
  0xb2   : > { %v1612_v45 = vpop.eup %1611  ;;  %v1162_v49 = vmul.f32 %v1610_v12, %v2541_v27  ;;  %v1192_v0 = vadd.f32 %v1191_v32, %v1190_v19  ;;  %v1206_v5 = vsel %vm1167_vm0, %v1160_v38, 0.0  ;;  %1177 = vst.msk [vmem:[%s2565_s10 + $0x48] sm:$0xff] %vm1167_vm0, %v1160_v38 }
  0xb3   : > { %v1614_v55 = vpop.eup %1613  ;;  %v1163_v22 = vmul.f32 %v1612_v45, %v2544_v6  ;;  %v1193_v37 = vsel %vm1167_vm0, %v1161_v15, 0.0  ;;  %v1207_v26 = vadd.f32 %v1206_v5, %v1205_v34  ;;  %1178 = vst.msk [vmem:[%s2565_s10 + $0x50] sm:$0xff] %vm1167_vm0, %v1161_v15 }
  0xb4   : > { %v1616_v9 = vpop.eup %1615  ;;  %v1164_v63 = vmul.f32 %v1614_v55, %v2547_v36  ;;  %v1194_v27 = vadd.f32 %v1193_v37, %v1192_v0  ;;  %v1208_v29 = vsel %vm1167_vm0, %v1162_v49, 0.0  ;;  %1179 = vst.msk [vmem:[%s2565_s10 + $0x58] sm:$0xff] %vm1167_vm0, %v1162_v49 }
  0xb5   : > { %v1618_v28 = vpop.eup %1617  ;;  %v1165_v23 = vmul.f32 %v1616_v9, %v2550_v62  ;;  %v1195_v6 = vsel %vm1167_vm0, %v1163_v22, 0.0  ;;  %v1209_v33 = vadd.f32 %v1208_v29, %v1207_v26  ;;  %1180 = vst.msk [vmem:[%s2565_s10 + $0x60] sm:$0xff] %vm1167_vm0, %v1163_v22 }
  0xb6   : > { %v1166_v20 = vmul.f32 %v1618_v28, %v2553_v7  ;;  %v1196_v53 = vadd.f32 %v1195_v6, %v1194_v27  ;;  %v1210_v36 = vsel %vm1167_vm0, %v1164_v63, 0.0  ;;  %1181 = vst.msk [vmem:[%s2565_s10 + $0x68] sm:$0xff] %vm1167_vm0, %v1164_v63 }
  0xb7   : > { %v1197_v51 = vsel %vm1167_vm0, %v1165_v23, 0.0  ;;  %v1211_v4 = vadd.f32 %v1210_v36, %v1209_v33  ;;  %1182 = vst.msk [vmem:[%s2565_s10 + $0x70] sm:$0xff] %vm1167_vm0, %v1165_v23 }
  0xb8   : > { %v1198_v62 = vadd.f32 %v1197_v51, %v1196_v53  ;;  %v1212_v14 = vsel %vm1167_vm0, %v1166_v20, 0.0  ;;  %1183 = vst.msk [vmem:[%s2565_s10 + $0x78] sm:$0xff] %vm1167_vm0, %v1166_v20  ;;  %s1715_s10 = smov [#allocation2]  }
  0xb9   : > { %v1213_v50 = vadd.f32 %v1212_v14, %v1211_v4  ;;  %s1623_s17 = sshll.u32 %s1715_s10, 4  ;;  %s1624_s17 = int_to_ptr.vmem [resolvable:$false] %s1623_s17 }
  0xba   : > { %v1214_v7 = vsel %vm1167_vm0, %v1198_v62, 0.0  ;;  %s1625_s23 = scalar_lea.vmem %s1624_s17, 32  ;;  %p1626_p7 = scmp.lt.s32.totalorder %s2636_s18, %s1624_s17 }
  0xbb   : > { %v1215_v18 = vsel %vm1167_vm0, %v1213_v50, 0.0  ;;  %p1627_p9 = scmp.lt.s32.totalorder %s1625_s23, %s1619_s27 }
  0xbc   : > { %v1216_v35 = vadd.f32 %v1215_v18, %v1214_v7 }
  0xbd   : > { %p1628_p10 = por %p1627_p9, %p1626_p7 }
  0xbe   : > { %v1217_v30 = vrot.slane %v1216_v35, 4 }
  0xbf   : > { %p1629_p11 = pnand %p1628_p10, %p1622_p6 }
  0xc0   : > { %v1218_v8 = vadd.f32 %v1217_v30, %v1216_v35 }
  0xc2   : > { %v1219_v42 = vrot.slane %v1218_v8, 2 }
  0xc4   : > { %v1220_v10 = vadd.f32 %v1219_v42, %v1218_v8 }
  0xc6   : > { %v1221_v52 = vrot.slane %v1220_v10, 1 }
  0xc8   : > { %v1222_v3 = vadd.f32 %v1221_v52, %v1220_v10 }
  0xca   : > { %1224 = vst.msk [vmem:[%s402_s21] sm:$0x1] %vm1223_vm2, %v1222_v3 }
  0xcb   : > { %1632 = shalt.err (!%p1629_p11)
}
  0xcc   : > { %s1633_s13 = scalar_lea.hbm %s2641_s28, 16  ;;  %s1637_s22 = scalar_lea.hbm %s2699_s7, 64 }
  0xcd   : > { %p1634_p12 = scmp.ne.s32.totalorder %s2641_s28, %s1633_s13  ;;  %p1638_p1 = scmp.lt.u32.totalorder %s2641_s28, %s2699_s7 }
  0xce   : > { %p1639_p2 = scmp.lt.u32.totalorder %s1637_s22, %s1633_s13  ;;  %p1641_p5 = scmp.lt.u32.totalorder %s1633_s13, %s2641_s28 }
  0xcf   : > { %p1635_p13 = pnand %p1634_p12, %p1807_p3 }
  0xd0   : > { %p1640_p4 = por %p1639_p2, %p1638_p1 }
  0xd1   : > { %p1636_p0 = pneg %p1635_p13 }
  0xd2   : > { %p1642_p6 = por %p1641_p5, %p1640_p4 }
  0xd4   : > { %p1643_p7 = pnand %p1642_p6, %p1636_p0 }
  0xd6   : > { %1646 = shalt.err (!%p1643_p7)
}
  0xd7   : > { %1484 = dma.vmem_to_hbm [thread:$0]  (%p1807_p3), %s2636_s18, 16, %s2641_s28, %s1236_s16  }
  0xd8 PF: > { %p1490_p9 = scmp.ge.s32.totalorder %s1713_s8, 2  ;;  %s1279_s27 = sand.u32 1, %s1685_s24  }
  0xd9   : > { %s1280_s17 = scalar_lea.sflag [#allocation3], %s1279_s27 }
  0xda   : > { %p1487_p10 = pnand %p1490_p9, %p1816_p8 }
  0xdc   : > { %1680 = dma.done.wait (!%p1487_p10), %s1280_s17, 16  }
  0xdd   : > { %1682 = vsyncadd (!%p1487_p10), %s1280_s17, 4294967280  ;;  %s21_s8 = sadd.s32 1, %s1713_s8   ;;  %s2924_s24 = smov %s1689_s25 }
  0xde   : > { %p18_p11 = scmp.ge.s32.totalorder %s21_s8, 6   ;;  %s2925_s25 = smov %s1693_s26 }
  0xdf   : > { %s2926_s26 = smov %s1825_s19  ;;  %s2927_s27 = smov %s1705_s29 }
  0xe0   : > { %s2928_s28 = smov %s1709_s30  ;;  %s2929_s29 = smov %s2932_s11 }
  0xe1   : > { %s2930_s30 = smov %s2936_s12  ;;  %20 = sbr.rel (!%p18_p11) target bundleno = 5 (0x5), region = 97 }
  0xe8   :  { %1284 = vsyncpa [#allocation3], 1 }
  0xe9   :  { %1286 = vsyncpa [#allocation3 + $0x1], 1 }

</bundles_post_ra>
